<compile_context>
chip_gen: v6e
topology: v6e:2x2x1
jax: 0.10.0
libtpu: 0.0.40
codegen_flags: <defaults>
</compile_context>

<pallas_src>
import functools
import math

import jax
import jax.numpy as jnp
import numpy as np
from jax.experimental import pallas as pl
from jax.experimental.pallas import tpu as pltpu

EMBED_DIM = 80
NUM_HEADS = 8
VECTOR_LENGTH = 4
HEAD_DIM = EMBED_DIM // NUM_HEADS  # 10


def _net_kernel(qk_ref, v_ref, qkv_ref, small_ref, out_ref, *, bt, sq, sk, num_heads):
    E = qkv_ref.shape[-1]
    Dh = E // num_heads
    VL = qk_ref.shape[-1]
    scale = 1.0 / math.sqrt(Dh)
    nq = bt * sq
    nk = bt * sk

    # Packed "small" rows: [0:VL]=W1^T, [VL]=W2^T, [VL+1]=b1, [VL+2]=b2, [VL+3]=bq,
    # [VL+4]=bk, [VL+5]=bv, [VL+6]=wo3 (= W3 @ Wo, folded out_proj+fc3), [VL+7]=b_out@col0.

    # fc1 + ReLU, fused over the concatenated (query rows; key rows) slab: ONE matmul.
    qk_act = jax.nn.relu(
        jnp.dot(qk_ref[...], small_ref[0:VL, :], preferred_element_type=jnp.float32)
        + small_ref[VL + 1:VL + 2, :])                          # (bt*(sq+sk), E)
    q_act = qk_act[0:nq, :]                                     # (bt*sq, E)
    k_act = qk_act[nq:nq + nk, :]                               # (bt*sk, E)

    # fc2 has in_features=1 -> outer product; broadcast multiply avoids a K=1 matmul.
    v_act = jax.nn.relu(v_ref[...] * small_ref[VL:VL + 1, :]
                        + small_ref[VL + 2:VL + 3, :])          # (bt*sk, E)

    # Fused whole-embedding in-proj matmuls; attention scale folded into Q once.
    Q = (jnp.dot(q_act, qkv_ref[0], preferred_element_type=jnp.float32)
         + small_ref[VL + 3:VL + 4, :]) * scale                 # (bt*sq, E)
    K = jnp.dot(k_act, qkv_ref[1], preferred_element_type=jnp.float32) \
        + small_ref[VL + 4:VL + 5, :]                           # (bt*sk, E)
    V = jnp.dot(v_act, qkv_ref[2], preferred_element_type=jnp.float32) \
        + small_ref[VL + 5:VL + 6, :]                           # (bt*sk, E)

    b_out = small_ref[VL + 7:VL + 8, 0:1]                       # (1, 1) = W3@bo + b3

    outs = []
    for b in range(bt):
        Qb = Q[b * sq:(b + 1) * sq, :]
        Kb = K[b * sk:(b + 1) * sk, :]
        Vb = V[b * sk:(b + 1) * sk, :]
        out_b = jnp.zeros((sq, 1), dtype=jnp.float32)
        for h in range(num_heads):
            lo, hi = h * Dh, (h + 1) * Dh
            qh = Qb[:, lo:hi]                                   # (sq, Dh)
            kh = Kb[:, lo:hi]                                   # (sk, Dh)
            vh = Vb[:, lo:hi]                                   # (sk, Dh)
            s = jax.lax.dot_general(qh, kh, (((1,), (1,)), ((), ())),
                                    preferred_element_type=jnp.float32)   # (sq, sk)
            m = jnp.max(s, axis=-1, keepdims=True)
            e = jnp.exp(s - m)
            p = e * pl.reciprocal(jnp.sum(e, axis=-1, keepdims=True))     # exact (1e-4 tol)
            ctx_h = jnp.dot(p, vh, preferred_element_type=jnp.float32)    # (sq, Dh)
            # Folded out_proj + fc3: contract the head dim against the wo3 row slice.
            out_b = out_b + jax.lax.dot_general(
                ctx_h, small_ref[VL + 6:VL + 7, lo:hi], (((1,), (1,)), ((), ())),
                preferred_element_type=jnp.float32)                       # (sq, 1)
        outs.append(out_b + b_out)

    # Single store per grid step (v5e has one vector-store slot).
    out_ref[...] = jnp.concatenate(outs, axis=0) if bt > 1 else outs[0]
    # TODO(synk): attn_output_weights (averaged per-head softmax) is not materialized;
    # the PyTorch forward discards it, so only `output` is produced.


def net_forward(key, query, value, params, *, batch_tile=None):
    B, Sq, VL = query.shape
    _, Sk, _ = key.shape
    # Bound the in-kernel batch unroll; larger B goes to the "parallel" grid axis
    # (shards across v7x's two TensorCores; on v5e/v6e B<=8 stays a single grid step).
    bt = min(B, 8) if batch_tile is None else batch_tile
    assert B % bt == 0
    G = B // bt

    # Per-tile contiguous layout: [query rows of tile ; key rows of tile] so fc1 is one
    # fused matmul per grid step and the q/k inputs are one DMA'd slab.
    q3 = query.reshape(G, bt * Sq, VL)
    k3 = key.reshape(G, bt * Sk, VL)
    qk = jnp.concatenate([q3, k3], axis=1).reshape(G * bt * (Sq + Sk), VL)
    v2 = value.reshape(B * Sk, 1)

    qkv_w, small = params["qkv_w"], params["small"]

    kernel = functools.partial(_net_kernel, bt=bt, sq=Sq, sk=Sk, num_heads=NUM_HEADS)

    out2 = pl.pallas_call(
        kernel,
        out_shape=jax.ShapeDtypeStruct((B * Sq, 1), jnp.float32),
        grid=(G,),
        in_specs=[
            pl.BlockSpec((bt * (Sq + Sk), VL), lambda i: (i, 0)),   # fused query+key rows
            pl.BlockSpec((bt * Sk, 1), lambda i: (i, 0)),           # value rows
            pl.BlockSpec(qkv_w.shape, lambda i: (0, 0, 0)),         # packed Wq^T/Wk^T/Wv^T
            pl.BlockSpec(small.shape, lambda i: (0, 0)),            # fc1/fc2 + biases + wo3
        ],
        out_specs=pl.BlockSpec((bt * Sq, 1), lambda i: (i, 0)),
        compiler_params=pltpu.CompilerParams(dimension_semantics=("parallel",)),
    )(qk, v2, qkv_w, small)
    return out2.reshape(B, Sq, 1)


def init_params(rng):
    """Deterministic init mimicking nn.Linear-style shapes (distinct keys per tensor)."""
    ks = jax.random.split(rng, 14)

    def lin(kw, kb, out_f, in_f):
        bound = 1.0 / math.sqrt(in_f)
        w = jax.random.uniform(kw, (out_f, in_f), jnp.float32, -bound, bound)
        b = jax.random.uniform(kb, (out_f,), jnp.float32, -bound, bound)
        return w, b

    E, VL = EMBED_DIM, VECTOR_LENGTH
    W1, b1 = lin(ks[0], ks[1], E, VL)    # fc1
    W2, b2 = lin(ks[2], ks[3], E, 1)     # fc2
    W3, b3 = lin(ks[4], ks[5], 1, E)     # fc3
    Wq, bq = lin(ks[6], ks[7], E, E)     # MHA in_proj (q / k / v blocks)
    Wk, bk = lin(ks[8], ks[9], E, E)
    Wv, bv = lin(ks[10], ks[11], E, E)
    Wo, bo = lin(ks[12], ks[13], E, E)   # MHA out_proj
    # NOTE: a real torch.nn.MultiheadAttention uses xavier_uniform for the packed in_proj;
    # initialization only matters if porting trained weights (then load them into `raw`).

    raw = dict(W1=W1, b1=b1, W2=W2, b2=b2, W3=W3, b3=b3,
               Wq=Wq, bq=bq, Wk=Wk, bk=bk, Wv=Wv, bv=bv, Wo=Wo, bo=bo)

    # Kernel-friendly packing: 2 weight arrays total.
    qkv_w = jnp.stack([Wq.T, Wk.T, Wv.T], axis=0)          # (3, E, E)

    # Fold out_proj + fc3 (attn_output is discarded): wo3 = W3 @ Wo, b_out = W3 @ bo + b3.
    wo3_row = W3 @ Wo                                      # (1, E) == (Wo^T @ W3^T)^T
    b_out = (W3 @ bo + b3).reshape(1)                      # (1,)
    b_out_row = jnp.zeros((1, E), jnp.float32).at[0, 0].set(b_out[0])

    small = jnp.concatenate([
        W1.T,                    # rows [0:VL]
        W2.T,                    # row  [VL]
        b1.reshape(1, E),        # row  [VL+1]
        b2.reshape(1, E),        # row  [VL+2]
        bq.reshape(1, E),        # row  [VL+3]
        bk.reshape(1, E),        # row  [VL+4]
        bv.reshape(1, E),        # row  [VL+5]
        wo3_row,                 # row  [VL+6]  (folded out_proj . fc3 weight)
        b_out_row,               # row  [VL+7]  (folded bias at column 0)
    ], axis=0)                   # (VL + 8, E) = (12, 80)

    params = dict(qkv_w=qkv_w, small=small)
    return params, raw


def reference_forward(key_in, query_in, value_in, raw):
    """Pure-JAX reference replicating nn.MultiheadAttention math (unfused weights)."""
    E, H, Dh = EMBED_DIM, NUM_HEADS, HEAD_DIM
    k = jax.nn.relu(key_in @ raw["W1"].T + raw["b1"])
    q = jax.nn.relu(query_in @ raw["W1"].T + raw["b1"])
    v = jax.nn.relu(value_in @ raw["W2"].T + raw["b2"])
    Q = q @ raw["Wq"].T + raw["bq"]
    K = k @ raw["Wk"].T + raw["bk"]
    V = v @ raw["Wv"].T + raw["bv"]
    B, Sq, _ = Q.shape
    Sk = K.shape[1]
    Qh = Q.reshape(B, Sq, H, Dh).transpose(0, 2, 1, 3)
    Kh = K.reshape(B, Sk, H, Dh).transpose(0, 2, 1, 3)
    Vh = V.reshape(B, Sk, H, Dh).transpose(0, 2, 1, 3)
    s = jnp.einsum("bhqd,bhkd->bhqk", Qh, Kh) / math.sqrt(Dh)
    p = jax.nn.softmax(s, axis=-1)
    a = jnp.einsum("bhqk,bhkd->bhqd", p, Vh).transpose(0, 2, 1, 3).reshape(B, Sq, E)
    attn = a @ raw["Wo"].T + raw["bo"]
    return attn @ raw["W3"].T + raw["b3"]


if __name__ == "__main__":
    rng = jax.random.PRNGKey(0)
    p_rng, k_rng, q_rng, v_rng = jax.random.split(rng, 4)

    B, Sq, Sk = 2, 8, 8
    key_in = jax.random.normal(k_rng, (B, Sk, VECTOR_LENGTH), jnp.float32)
    query_in = jax.random.normal(q_rng, (B, Sq, VECTOR_LENGTH), jnp.float32)
    value_in = jax.random.normal(v_rng, (B, Sk, 1), jnp.float32)

    params, raw = init_params(p_rng)

    out = jax.block_until_ready(net_forward(key_in, query_in, value_in, params))
    ref = jax.block_until_ready(reference_forward(key_in, query_in, value_in, raw))
    np.testing.assert_allclose(np.asarray(out), np.asarray(ref), rtol=1e-4, atol=1e-4)

    print("KERNEL_OK")
</pallas_src>

<mosaic_0001>
module attributes {stable_mosaic.version = 11 : i64} {
  func.func @_net_kernel(%arg0: i32, %arg1: memref<32x4xf32, #tpu.memory_space<vmem>>, %arg2: memref<16x1xf32, #tpu.memory_space<vmem>>, %arg3: memref<3x80x80xf32, #tpu.memory_space<vmem>>, %arg4: memref<12x80xf32, #tpu.memory_space<vmem>>, %arg5: memref<16x1xf32, #tpu.memory_space<vmem>>) attributes {dimension_semantics = [#tpu.dimension_semantics<parallel>], iteration_bounds = array<i64: 1>, scalar_prefetch = 0 : i64, scratch_operands = 0 : i64, tpu.core_type = #tpu.core_type<tc>, window_params = [{transform_indices = @transform_0, window_bounds = array<i64: 32, 4>}, {transform_indices = @transform_1, window_bounds = array<i64: 16, 1>}, {pipeline_mode = #tpu.pipeline_mode<synchronous>, transform_indices = @transform_2, window_bounds = array<i64: 3, 80, 80>}, {pipeline_mode = #tpu.pipeline_mode<synchronous>, transform_indices = @transform_3, window_bounds = array<i64: 12, 80>}, {transform_indices = @transform_4, window_bounds = array<i64: 16, 1>}]} {
    %c0 = arith.constant 0 : index
    %c0_0 = arith.constant 0 : index
    %0 = vector.load %arg1[%c0, %c0_0] : memref<32x4xf32, #tpu.memory_space<vmem>>, vector<32x4xf32>
    %c0_1 = arith.constant 0 : index
    %c0_2 = arith.constant 0 : index
    %1 = vector.load %arg4[%c0_1, %c0_2] : memref<12x80xf32, #tpu.memory_space<vmem>>, vector<4x80xf32>
    %cst = arith.constant dense<0.000000e+00> : vector<32x80xf32>
    %2 = tpu.matmul %0, %1, %cst {dimension_numbers = #tpu.dot_dimension_numbers<[1], [0], [0], [1], [0, 0, 1, 1], [], []>} : vector<32x4xf32>, vector<4x80xf32>, vector<32x80xf32> -> vector<32x80xf32>
    %c5 = arith.constant 5 : index
    %c0_3 = arith.constant 0 : index
    %3 = vector.load %arg4[%c5, %c0_3] : memref<12x80xf32, #tpu.memory_space<vmem>>, vector<1x80xf32>
    %4 = vector.broadcast %3 : vector<1x80xf32> to vector<32x80xf32>
    %5 = arith.addf %2, %4 : vector<32x80xf32>
    %cst_4 = arith.constant 0.000000e+00 : f32
    %6 = vector.broadcast %cst_4 : f32 to vector<32x80xf32>
    %7 = arith.maximumf %5, %6 : vector<32x80xf32>
    %8 = vector.extract_strided_slice %7 {offsets = [0, 0], sizes = [16, 80], strides = [1, 1]} : vector<32x80xf32> to vector<16x80xf32>
    %9 = vector.extract_strided_slice %7 {offsets = [16, 0], sizes = [16, 80], strides = [1, 1]} : vector<32x80xf32> to vector<16x80xf32>
    %c0_5 = arith.constant 0 : index
    %c0_6 = arith.constant 0 : index
    %10 = vector.load %arg2[%c0_5, %c0_6] : memref<16x1xf32, #tpu.memory_space<vmem>>, vector<16x1xf32>
    %c4 = arith.constant 4 : index
    %c0_7 = arith.constant 0 : index
    %11 = vector.load %arg4[%c4, %c0_7] : memref<12x80xf32, #tpu.memory_space<vmem>>, vector<1x80xf32>
    %12 = vector.broadcast %10 : vector<16x1xf32> to vector<16x80xf32>
    %13 = vector.broadcast %11 : vector<1x80xf32> to vector<16x80xf32>
    %14 = arith.mulf %12, %13 : vector<16x80xf32>
    %c6 = arith.constant 6 : index
    %c0_8 = arith.constant 0 : index
    %15 = vector.load %arg4[%c6, %c0_8] : memref<12x80xf32, #tpu.memory_space<vmem>>, vector<1x80xf32>
    %16 = vector.broadcast %15 : vector<1x80xf32> to vector<16x80xf32>
    %17 = arith.addf %14, %16 : vector<16x80xf32>
    %cst_9 = arith.constant 0.000000e+00 : f32
    %18 = vector.broadcast %cst_9 : f32 to vector<16x80xf32>
    %19 = arith.maximumf %17, %18 : vector<16x80xf32>
    %c0_10 = arith.constant 0 : index
    %c0_11 = arith.constant 0 : index
    %c0_12 = arith.constant 0 : index
    %20 = vector.load %arg3[%c0_10, %c0_11, %c0_12] : memref<3x80x80xf32, #tpu.memory_space<vmem>>, vector<1x80x80xf32>
    %21 = vector.shape_cast %20 : vector<1x80x80xf32> to vector<80x80xf32>
    %cst_13 = arith.constant dense<0.000000e+00> : vector<16x80xf32>
    %22 = tpu.matmul %8, %21, %cst_13 {dimension_numbers = #tpu.dot_dimension_numbers<[1], [0], [0], [1], [0, 0, 1, 1], [], []>} : vector<16x80xf32>, vector<80x80xf32>, vector<16x80xf32> -> vector<16x80xf32>
    %c7 = arith.constant 7 : index
    %c0_14 = arith.constant 0 : index
    %23 = vector.load %arg4[%c7, %c0_14] : memref<12x80xf32, #tpu.memory_space<vmem>>, vector<1x80xf32>
    %24 = vector.broadcast %23 : vector<1x80xf32> to vector<16x80xf32>
    %25 = arith.addf %22, %24 : vector<16x80xf32>
    %cst_15 = arith.constant 0.316227764 : f32
    %26 = vector.broadcast %cst_15 : f32 to vector<16x80xf32>
    %27 = arith.mulf %25, %26 : vector<16x80xf32>
    %c1 = arith.constant 1 : index
    %c0_16 = arith.constant 0 : index
    %c0_17 = arith.constant 0 : index
    %28 = vector.load %arg3[%c1, %c0_16, %c0_17] : memref<3x80x80xf32, #tpu.memory_space<vmem>>, vector<1x80x80xf32>
    %29 = vector.shape_cast %28 : vector<1x80x80xf32> to vector<80x80xf32>
    %cst_18 = arith.constant dense<0.000000e+00> : vector<16x80xf32>
    %30 = tpu.matmul %9, %29, %cst_18 {dimension_numbers = #tpu.dot_dimension_numbers<[1], [0], [0], [1], [0, 0, 1, 1], [], []>} : vector<16x80xf32>, vector<80x80xf32>, vector<16x80xf32> -> vector<16x80xf32>
    %c8 = arith.constant 8 : index
    %c0_19 = arith.constant 0 : index
    %31 = vector.load %arg4[%c8, %c0_19] : memref<12x80xf32, #tpu.memory_space<vmem>>, vector<1x80xf32>
    %32 = vector.broadcast %31 : vector<1x80xf32> to vector<16x80xf32>
    %33 = arith.addf %30, %32 : vector<16x80xf32>
    %c2 = arith.constant 2 : index
    %c0_20 = arith.constant 0 : index
    %c0_21 = arith.constant 0 : index
    %34 = vector.load %arg3[%c2, %c0_20, %c0_21] : memref<3x80x80xf32, #tpu.memory_space<vmem>>, vector<1x80x80xf32>
    %35 = vector.shape_cast %34 : vector<1x80x80xf32> to vector<80x80xf32>
    %cst_22 = arith.constant dense<0.000000e+00> : vector<16x80xf32>
    %36 = tpu.matmul %19, %35, %cst_22 {dimension_numbers = #tpu.dot_dimension_numbers<[1], [0], [0], [1], [0, 0, 1, 1], [], []>} : vector<16x80xf32>, vector<80x80xf32>, vector<16x80xf32> -> vector<16x80xf32>
    %c9 = arith.constant 9 : index
    %c0_23 = arith.constant 0 : index
    %37 = vector.load %arg4[%c9, %c0_23] : memref<12x80xf32, #tpu.memory_space<vmem>>, vector<1x80xf32>
    %38 = vector.broadcast %37 : vector<1x80xf32> to vector<16x80xf32>
    %39 = arith.addf %36, %38 : vector<16x80xf32>
    %c11 = arith.constant 11 : index
    %c0_24 = arith.constant 0 : index
    %40 = vector.load %arg4[%c11, %c0_24] : memref<12x80xf32, #tpu.memory_space<vmem>>, vector<1x1xf32>
    %41 = vector.extract_strided_slice %27 {offsets = [0, 0], sizes = [8, 80], strides = [1, 1]} : vector<16x80xf32> to vector<8x80xf32>
    %42 = vector.extract_strided_slice %33 {offsets = [0, 0], sizes = [8, 80], strides = [1, 1]} : vector<16x80xf32> to vector<8x80xf32>
    %43 = vector.extract_strided_slice %39 {offsets = [0, 0], sizes = [8, 80], strides = [1, 1]} : vector<16x80xf32> to vector<8x80xf32>
    %cst_25 = arith.constant 0.000000e+00 : f32
    %44 = vector.broadcast %cst_25 : f32 to vector<8x1xf32>
    %45 = vector.extract_strided_slice %41 {offsets = [0, 0], sizes = [8, 10], strides = [1, 1]} : vector<8x80xf32> to vector<8x10xf32>
    %46 = vector.extract_strided_slice %42 {offsets = [0, 0], sizes = [8, 10], strides = [1, 1]} : vector<8x80xf32> to vector<8x10xf32>
    %47 = vector.extract_strided_slice %43 {offsets = [0, 0], sizes = [8, 10], strides = [1, 1]} : vector<8x80xf32> to vector<8x10xf32>
    %cst_26 = arith.constant dense<0.000000e+00> : vector<8x8xf32>
    %48 = tpu.matmul %45, %46, %cst_26 {dimension_numbers = #tpu.dot_dimension_numbers<[1], [1], [0], [0], [0, 0, 1, 0], [], []>} : vector<8x10xf32>, vector<8x10xf32>, vector<8x8xf32> -> vector<8x8xf32>
    %cst_27 = arith.constant dense<0xFF800000> : vector<8xf32>
    %49 = vector.multi_reduction <maximumf>, %48, %cst_27 [1] : vector<8x8xf32> to vector<8xf32>
    %50 = vector.shape_cast %49 : vector<8xf32> to vector<8x1xf32>
    %51 = vector.broadcast %50 : vector<8x1xf32> to vector<8x8xf32>
    %52 = arith.subf %48, %51 : vector<8x8xf32>
    %53 = math.exp %52 : vector<8x8xf32>
    %cst_28 = arith.constant dense<0.000000e+00> : vector<8xf32>
    %54 = vector.multi_reduction <add>, %53, %cst_28 [1] : vector<8x8xf32> to vector<8xf32>
    %55 = vector.shape_cast %54 : vector<8xf32> to vector<8x1xf32>
    %56 = tpu.reciprocal %55 : vector<8x1xf32> -> vector<8x1xf32>
    %57 = vector.broadcast %56 : vector<8x1xf32> to vector<8x8xf32>
    %58 = arith.mulf %53, %57 : vector<8x8xf32>
    %cst_29 = arith.constant dense<0.000000e+00> : vector<8x10xf32>
    %59 = tpu.matmul %58, %47, %cst_29 {dimension_numbers = #tpu.dot_dimension_numbers<[1], [0], [0], [1], [0, 0, 1, 1], [], []>} : vector<8x8xf32>, vector<8x10xf32>, vector<8x10xf32> -> vector<8x10xf32>
    %c10 = arith.constant 10 : index
    %c0_30 = arith.constant 0 : index
    %60 = vector.load %arg4[%c10, %c0_30] : memref<12x80xf32, #tpu.memory_space<vmem>>, vector<1x10xf32>
    %cst_31 = arith.constant dense<0.000000e+00> : vector<8x1xf32>
    %61 = tpu.matmul %59, %60, %cst_31 {dimension_numbers = #tpu.dot_dimension_numbers<[1], [1], [0], [0], [0, 0, 1, 0], [], []>} : vector<8x10xf32>, vector<1x10xf32>, vector<8x1xf32> -> vector<8x1xf32>
    %62 = arith.addf %44, %61 : vector<8x1xf32>
    %63 = vector.extract_strided_slice %41 {offsets = [0, 10], sizes = [8, 10], strides = [1, 1]} : vector<8x80xf32> to vector<8x10xf32>
    %64 = vector.extract_strided_slice %42 {offsets = [0, 10], sizes = [8, 10], strides = [1, 1]} : vector<8x80xf32> to vector<8x10xf32>
    %65 = vector.extract_strided_slice %43 {offsets = [0, 10], sizes = [8, 10], strides = [1, 1]} : vector<8x80xf32> to vector<8x10xf32>
    %cst_32 = arith.constant dense<0.000000e+00> : vector<8x8xf32>
    %66 = tpu.matmul %63, %64, %cst_32 {dimension_numbers = #tpu.dot_dimension_numbers<[1], [1], [0], [0], [0, 0, 1, 0], [], []>} : vector<8x10xf32>, vector<8x10xf32>, vector<8x8xf32> -> vector<8x8xf32>
    %cst_33 = arith.constant dense<0xFF800000> : vector<8xf32>
    %67 = vector.multi_reduction <maximumf>, %66, %cst_33 [1] : vector<8x8xf32> to vector<8xf32>
    %68 = vector.shape_cast %67 : vector<8xf32> to vector<8x1xf32>
    %69 = vector.broadcast %68 : vector<8x1xf32> to vector<8x8xf32>
    %70 = arith.subf %66, %69 : vector<8x8xf32>
    %71 = math.exp %70 : vector<8x8xf32>
    %cst_34 = arith.constant dense<0.000000e+00> : vector<8xf32>
    %72 = vector.multi_reduction <add>, %71, %cst_34 [1] : vector<8x8xf32> to vector<8xf32>
    %73 = vector.shape_cast %72 : vector<8xf32> to vector<8x1xf32>
    %74 = tpu.reciprocal %73 : vector<8x1xf32> -> vector<8x1xf32>
    %75 = vector.broadcast %74 : vector<8x1xf32> to vector<8x8xf32>
    %76 = arith.mulf %71, %75 : vector<8x8xf32>
    %cst_35 = arith.constant dense<0.000000e+00> : vector<8x10xf32>
    %77 = tpu.matmul %76, %65, %cst_35 {dimension_numbers = #tpu.dot_dimension_numbers<[1], [0], [0], [1], [0, 0, 1, 1], [], []>} : vector<8x8xf32>, vector<8x10xf32>, vector<8x10xf32> -> vector<8x10xf32>
    %c10_36 = arith.constant 10 : index
    %c10_37 = arith.constant 10 : index
    %78 = vector.load %arg4[%c10_36, %c10_37] : memref<12x80xf32, #tpu.memory_space<vmem>>, vector<1x10xf32>
    %cst_38 = arith.constant dense<0.000000e+00> : vector<8x1xf32>
    %79 = tpu.matmul %77, %78, %cst_38 {dimension_numbers = #tpu.dot_dimension_numbers<[1], [1], [0], [0], [0, 0, 1, 0], [], []>} : vector<8x10xf32>, vector<1x10xf32>, vector<8x1xf32> -> vector<8x1xf32>
    %80 = arith.addf %62, %79 : vector<8x1xf32>
    %81 = vector.extract_strided_slice %41 {offsets = [0, 20], sizes = [8, 10], strides = [1, 1]} : vector<8x80xf32> to vector<8x10xf32>
    %82 = vector.extract_strided_slice %42 {offsets = [0, 20], sizes = [8, 10], strides = [1, 1]} : vector<8x80xf32> to vector<8x10xf32>
    %83 = vector.extract_strided_slice %43 {offsets = [0, 20], sizes = [8, 10], strides = [1, 1]} : vector<8x80xf32> to vector<8x10xf32>
    %cst_39 = arith.constant dense<0.000000e+00> : vector<8x8xf32>
    %84 = tpu.matmul %81, %82, %cst_39 {dimension_numbers = #tpu.dot_dimension_numbers<[1], [1], [0], [0], [0, 0, 1, 0], [], []>} : vector<8x10xf32>, vector<8x10xf32>, vector<8x8xf32> -> vector<8x8xf32>
    %cst_40 = arith.constant dense<0xFF800000> : vector<8xf32>
    %85 = vector.multi_reduction <maximumf>, %84, %cst_40 [1] : vector<8x8xf32> to vector<8xf32>
    %86 = vector.shape_cast %85 : vector<8xf32> to vector<8x1xf32>
    %87 = vector.broadcast %86 : vector<8x1xf32> to vector<8x8xf32>
    %88 = arith.subf %84, %87 : vector<8x8xf32>
    %89 = math.exp %88 : vector<8x8xf32>
    %cst_41 = arith.constant dense<0.000000e+00> : vector<8xf32>
    %90 = vector.multi_reduction <add>, %89, %cst_41 [1] : vector<8x8xf32> to vector<8xf32>
    %91 = vector.shape_cast %90 : vector<8xf32> to vector<8x1xf32>
    %92 = tpu.reciprocal %91 : vector<8x1xf32> -> vector<8x1xf32>
    %93 = vector.broadcast %92 : vector<8x1xf32> to vector<8x8xf32>
    %94 = arith.mulf %89, %93 : vector<8x8xf32>
    %cst_42 = arith.constant dense<0.000000e+00> : vector<8x10xf32>
    %95 = tpu.matmul %94, %83, %cst_42 {dimension_numbers = #tpu.dot_dimension_numbers<[1], [0], [0], [1], [0, 0, 1, 1], [], []>} : vector<8x8xf32>, vector<8x10xf32>, vector<8x10xf32> -> vector<8x10xf32>
    %c10_43 = arith.constant 10 : index
    %c20 = arith.constant 20 : index
    %96 = vector.load %arg4[%c10_43, %c20] : memref<12x80xf32, #tpu.memory_space<vmem>>, vector<1x10xf32>
    %cst_44 = arith.constant dense<0.000000e+00> : vector<8x1xf32>
    %97 = tpu.matmul %95, %96, %cst_44 {dimension_numbers = #tpu.dot_dimension_numbers<[1], [1], [0], [0], [0, 0, 1, 0], [], []>} : vector<8x10xf32>, vector<1x10xf32>, vector<8x1xf32> -> vector<8x1xf32>
    %98 = arith.addf %80, %97 : vector<8x1xf32>
    %99 = vector.extract_strided_slice %41 {offsets = [0, 30], sizes = [8, 10], strides = [1, 1]} : vector<8x80xf32> to vector<8x10xf32>
    %100 = vector.extract_strided_slice %42 {offsets = [0, 30], sizes = [8, 10], strides = [1, 1]} : vector<8x80xf32> to vector<8x10xf32>
    %101 = vector.extract_strided_slice %43 {offsets = [0, 30], sizes = [8, 10], strides = [1, 1]} : vector<8x80xf32> to vector<8x10xf32>
    %cst_45 = arith.constant dense<0.000000e+00> : vector<8x8xf32>
    %102 = tpu.matmul %99, %100, %cst_45 {dimension_numbers = #tpu.dot_dimension_numbers<[1], [1], [0], [0], [0, 0, 1, 0], [], []>} : vector<8x10xf32>, vector<8x10xf32>, vector<8x8xf32> -> vector<8x8xf32>
    %cst_46 = arith.constant dense<0xFF800000> : vector<8xf32>
    %103 = vector.multi_reduction <maximumf>, %102, %cst_46 [1] : vector<8x8xf32> to vector<8xf32>
    %104 = vector.shape_cast %103 : vector<8xf32> to vector<8x1xf32>
    %105 = vector.broadcast %104 : vector<8x1xf32> to vector<8x8xf32>
    %106 = arith.subf %102, %105 : vector<8x8xf32>
    %107 = math.exp %106 : vector<8x8xf32>
    %cst_47 = arith.constant dense<0.000000e+00> : vector<8xf32>
    %108 = vector.multi_reduction <add>, %107, %cst_47 [1] : vector<8x8xf32> to vector<8xf32>
    %109 = vector.shape_cast %108 : vector<8xf32> to vector<8x1xf32>
    %110 = tpu.reciprocal %109 : vector<8x1xf32> -> vector<8x1xf32>
    %111 = vector.broadcast %110 : vector<8x1xf32> to vector<8x8xf32>
    %112 = arith.mulf %107, %111 : vector<8x8xf32>
    %cst_48 = arith.constant dense<0.000000e+00> : vector<8x10xf32>
    %113 = tpu.matmul %112, %101, %cst_48 {dimension_numbers = #tpu.dot_dimension_numbers<[1], [0], [0], [1], [0, 0, 1, 1], [], []>} : vector<8x8xf32>, vector<8x10xf32>, vector<8x10xf32> -> vector<8x10xf32>
    %c10_49 = arith.constant 10 : index
    %c30 = arith.constant 30 : index
    %114 = vector.load %arg4[%c10_49, %c30] : memref<12x80xf32, #tpu.memory_space<vmem>>, vector<1x10xf32>
    %cst_50 = arith.constant dense<0.000000e+00> : vector<8x1xf32>
    %115 = tpu.matmul %113, %114, %cst_50 {dimension_numbers = #tpu.dot_dimension_numbers<[1], [1], [0], [0], [0, 0, 1, 0], [], []>} : vector<8x10xf32>, vector<1x10xf32>, vector<8x1xf32> -> vector<8x1xf32>
    %116 = arith.addf %98, %115 : vector<8x1xf32>
    %117 = vector.extract_strided_slice %41 {offsets = [0, 40], sizes = [8, 10], strides = [1, 1]} : vector<8x80xf32> to vector<8x10xf32>
    %118 = vector.extract_strided_slice %42 {offsets = [0, 40], sizes = [8, 10], strides = [1, 1]} : vector<8x80xf32> to vector<8x10xf32>
    %119 = vector.extract_strided_slice %43 {offsets = [0, 40], sizes = [8, 10], strides = [1, 1]} : vector<8x80xf32> to vector<8x10xf32>
    %cst_51 = arith.constant dense<0.000000e+00> : vector<8x8xf32>
    %120 = tpu.matmul %117, %118, %cst_51 {dimension_numbers = #tpu.dot_dimension_numbers<[1], [1], [0], [0], [0, 0, 1, 0], [], []>} : vector<8x10xf32>, vector<8x10xf32>, vector<8x8xf32> -> vector<8x8xf32>
    %cst_52 = arith.constant dense<0xFF800000> : vector<8xf32>
    %121 = vector.multi_reduction <maximumf>, %120, %cst_52 [1] : vector<8x8xf32> to vector<8xf32>
    %122 = vector.shape_cast %121 : vector<8xf32> to vector<8x1xf32>
    %123 = vector.broadcast %122 : vector<8x1xf32> to vector<8x8xf32>
    %124 = arith.subf %120, %123 : vector<8x8xf32>
    %125 = math.exp %124 : vector<8x8xf32>
    %cst_53 = arith.constant dense<0.000000e+00> : vector<8xf32>
    %126 = vector.multi_reduction <add>, %125, %cst_53 [1] : vector<8x8xf32> to vector<8xf32>
    %127 = vector.shape_cast %126 : vector<8xf32> to vector<8x1xf32>
    %128 = tpu.reciprocal %127 : vector<8x1xf32> -> vector<8x1xf32>
    %129 = vector.broadcast %128 : vector<8x1xf32> to vector<8x8xf32>
    %130 = arith.mulf %125, %129 : vector<8x8xf32>
    %cst_54 = arith.constant dense<0.000000e+00> : vector<8x10xf32>
    %131 = tpu.matmul %130, %119, %cst_54 {dimension_numbers = #tpu.dot_dimension_numbers<[1], [0], [0], [1], [0, 0, 1, 1], [], []>} : vector<8x8xf32>, vector<8x10xf32>, vector<8x10xf32> -> vector<8x10xf32>
    %c10_55 = arith.constant 10 : index
    %c40 = arith.constant 40 : index
    %132 = vector.load %arg4[%c10_55, %c40] : memref<12x80xf32, #tpu.memory_space<vmem>>, vector<1x10xf32>
    %cst_56 = arith.constant dense<0.000000e+00> : vector<8x1xf32>
    %133 = tpu.matmul %131, %132, %cst_56 {dimension_numbers = #tpu.dot_dimension_numbers<[1], [1], [0], [0], [0, 0, 1, 0], [], []>} : vector<8x10xf32>, vector<1x10xf32>, vector<8x1xf32> -> vector<8x1xf32>
    %134 = arith.addf %116, %133 : vector<8x1xf32>
    %135 = vector.extract_strided_slice %41 {offsets = [0, 50], sizes = [8, 10], strides = [1, 1]} : vector<8x80xf32> to vector<8x10xf32>
    %136 = vector.extract_strided_slice %42 {offsets = [0, 50], sizes = [8, 10], strides = [1, 1]} : vector<8x80xf32> to vector<8x10xf32>
    %137 = vector.extract_strided_slice %43 {offsets = [0, 50], sizes = [8, 10], strides = [1, 1]} : vector<8x80xf32> to vector<8x10xf32>
    %cst_57 = arith.constant dense<0.000000e+00> : vector<8x8xf32>
    %138 = tpu.matmul %135, %136, %cst_57 {dimension_numbers = #tpu.dot_dimension_numbers<[1], [1], [0], [0], [0, 0, 1, 0], [], []>} : vector<8x10xf32>, vector<8x10xf32>, vector<8x8xf32> -> vector<8x8xf32>
    %cst_58 = arith.constant dense<0xFF800000> : vector<8xf32>
    %139 = vector.multi_reduction <maximumf>, %138, %cst_58 [1] : vector<8x8xf32> to vector<8xf32>
    %140 = vector.shape_cast %139 : vector<8xf32> to vector<8x1xf32>
    %141 = vector.broadcast %140 : vector<8x1xf32> to vector<8x8xf32>
    %142 = arith.subf %138, %141 : vector<8x8xf32>
    %143 = math.exp %142 : vector<8x8xf32>
    %cst_59 = arith.constant dense<0.000000e+00> : vector<8xf32>
    %144 = vector.multi_reduction <add>, %143, %cst_59 [1] : vector<8x8xf32> to vector<8xf32>
    %145 = vector.shape_cast %144 : vector<8xf32> to vector<8x1xf32>
    %146 = tpu.reciprocal %145 : vector<8x1xf32> -> vector<8x1xf32>
    %147 = vector.broadcast %146 : vector<8x1xf32> to vector<8x8xf32>
    %148 = arith.mulf %143, %147 : vector<8x8xf32>
    %cst_60 = arith.constant dense<0.000000e+00> : vector<8x10xf32>
    %149 = tpu.matmul %148, %137, %cst_60 {dimension_numbers = #tpu.dot_dimension_numbers<[1], [0], [0], [1], [0, 0, 1, 1], [], []>} : vector<8x8xf32>, vector<8x10xf32>, vector<8x10xf32> -> vector<8x10xf32>
    %c10_61 = arith.constant 10 : index
    %c50 = arith.constant 50 : index
    %150 = vector.load %arg4[%c10_61, %c50] : memref<12x80xf32, #tpu.memory_space<vmem>>, vector<1x10xf32>
    %cst_62 = arith.constant dense<0.000000e+00> : vector<8x1xf32>
    %151 = tpu.matmul %149, %150, %cst_62 {dimension_numbers = #tpu.dot_dimension_numbers<[1], [1], [0], [0], [0, 0, 1, 0], [], []>} : vector<8x10xf32>, vector<1x10xf32>, vector<8x1xf32> -> vector<8x1xf32>
    %152 = arith.addf %134, %151 : vector<8x1xf32>
    %153 = vector.extract_strided_slice %41 {offsets = [0, 60], sizes = [8, 10], strides = [1, 1]} : vector<8x80xf32> to vector<8x10xf32>
    %154 = vector.extract_strided_slice %42 {offsets = [0, 60], sizes = [8, 10], strides = [1, 1]} : vector<8x80xf32> to vector<8x10xf32>
    %155 = vector.extract_strided_slice %43 {offsets = [0, 60], sizes = [8, 10], strides = [1, 1]} : vector<8x80xf32> to vector<8x10xf32>
    %cst_63 = arith.constant dense<0.000000e+00> : vector<8x8xf32>
    %156 = tpu.matmul %153, %154, %cst_63 {dimension_numbers = #tpu.dot_dimension_numbers<[1], [1], [0], [0], [0, 0, 1, 0], [], []>} : vector<8x10xf32>, vector<8x10xf32>, vector<8x8xf32> -> vector<8x8xf32>
    %cst_64 = arith.constant dense<0xFF800000> : vector<8xf32>
    %157 = vector.multi_reduction <maximumf>, %156, %cst_64 [1] : vector<8x8xf32> to vector<8xf32>
    %158 = vector.shape_cast %157 : vector<8xf32> to vector<8x1xf32>
    %159 = vector.broadcast %158 : vector<8x1xf32> to vector<8x8xf32>
    %160 = arith.subf %156, %159 : vector<8x8xf32>
    %161 = math.exp %160 : vector<8x8xf32>
    %cst_65 = arith.constant dense<0.000000e+00> : vector<8xf32>
    %162 = vector.multi_reduction <add>, %161, %cst_65 [1] : vector<8x8xf32> to vector<8xf32>
    %163 = vector.shape_cast %162 : vector<8xf32> to vector<8x1xf32>
    %164 = tpu.reciprocal %163 : vector<8x1xf32> -> vector<8x1xf32>
    %165 = vector.broadcast %164 : vector<8x1xf32> to vector<8x8xf32>
    %166 = arith.mulf %161, %165 : vector<8x8xf32>
    %cst_66 = arith.constant dense<0.000000e+00> : vector<8x10xf32>
    %167 = tpu.matmul %166, %155, %cst_66 {dimension_numbers = #tpu.dot_dimension_numbers<[1], [0], [0], [1], [0, 0, 1, 1], [], []>} : vector<8x8xf32>, vector<8x10xf32>, vector<8x10xf32> -> vector<8x10xf32>
    %c10_67 = arith.constant 10 : index
    %c60 = arith.constant 60 : index
    %168 = vector.load %arg4[%c10_67, %c60] : memref<12x80xf32, #tpu.memory_space<vmem>>, vector<1x10xf32>
    %cst_68 = arith.constant dense<0.000000e+00> : vector<8x1xf32>
    %169 = tpu.matmul %167, %168, %cst_68 {dimension_numbers = #tpu.dot_dimension_numbers<[1], [1], [0], [0], [0, 0, 1, 0], [], []>} : vector<8x10xf32>, vector<1x10xf32>, vector<8x1xf32> -> vector<8x1xf32>
    %170 = arith.addf %152, %169 : vector<8x1xf32>
    %171 = vector.extract_strided_slice %41 {offsets = [0, 70], sizes = [8, 10], strides = [1, 1]} : vector<8x80xf32> to vector<8x10xf32>
    %172 = vector.extract_strided_slice %42 {offsets = [0, 70], sizes = [8, 10], strides = [1, 1]} : vector<8x80xf32> to vector<8x10xf32>
    %173 = vector.extract_strided_slice %43 {offsets = [0, 70], sizes = [8, 10], strides = [1, 1]} : vector<8x80xf32> to vector<8x10xf32>
    %cst_69 = arith.constant dense<0.000000e+00> : vector<8x8xf32>
    %174 = tpu.matmul %171, %172, %cst_69 {dimension_numbers = #tpu.dot_dimension_numbers<[1], [1], [0], [0], [0, 0, 1, 0], [], []>} : vector<8x10xf32>, vector<8x10xf32>, vector<8x8xf32> -> vector<8x8xf32>
    %cst_70 = arith.constant dense<0xFF800000> : vector<8xf32>
    %175 = vector.multi_reduction <maximumf>, %174, %cst_70 [1] : vector<8x8xf32> to vector<8xf32>
    %176 = vector.shape_cast %175 : vector<8xf32> to vector<8x1xf32>
    %177 = vector.broadcast %176 : vector<8x1xf32> to vector<8x8xf32>
    %178 = arith.subf %174, %177 : vector<8x8xf32>
    %179 = math.exp %178 : vector<8x8xf32>
    %cst_71 = arith.constant dense<0.000000e+00> : vector<8xf32>
    %180 = vector.multi_reduction <add>, %179, %cst_71 [1] : vector<8x8xf32> to vector<8xf32>
    %181 = vector.shape_cast %180 : vector<8xf32> to vector<8x1xf32>
    %182 = tpu.reciprocal %181 : vector<8x1xf32> -> vector<8x1xf32>
    %183 = vector.broadcast %182 : vector<8x1xf32> to vector<8x8xf32>
    %184 = arith.mulf %179, %183 : vector<8x8xf32>
    %cst_72 = arith.constant dense<0.000000e+00> : vector<8x10xf32>
    %185 = tpu.matmul %184, %173, %cst_72 {dimension_numbers = #tpu.dot_dimension_numbers<[1], [0], [0], [1], [0, 0, 1, 1], [], []>} : vector<8x8xf32>, vector<8x10xf32>, vector<8x10xf32> -> vector<8x10xf32>
    %c10_73 = arith.constant 10 : index
    %c70 = arith.constant 70 : index
    %186 = vector.load %arg4[%c10_73, %c70] : memref<12x80xf32, #tpu.memory_space<vmem>>, vector<1x10xf32>
    %cst_74 = arith.constant dense<0.000000e+00> : vector<8x1xf32>
    %187 = tpu.matmul %185, %186, %cst_74 {dimension_numbers = #tpu.dot_dimension_numbers<[1], [1], [0], [0], [0, 0, 1, 0], [], []>} : vector<8x10xf32>, vector<1x10xf32>, vector<8x1xf32> -> vector<8x1xf32>
    %188 = arith.addf %170, %187 : vector<8x1xf32>
    %189 = vector.broadcast %40 : vector<1x1xf32> to vector<8x1xf32>
    %190 = arith.addf %188, %189 : vector<8x1xf32>
    %191 = vector.extract_strided_slice %27 {offsets = [8, 0], sizes = [8, 80], strides = [1, 1]} : vector<16x80xf32> to vector<8x80xf32>
    %192 = vector.extract_strided_slice %33 {offsets = [8, 0], sizes = [8, 80], strides = [1, 1]} : vector<16x80xf32> to vector<8x80xf32>
    %193 = vector.extract_strided_slice %39 {offsets = [8, 0], sizes = [8, 80], strides = [1, 1]} : vector<16x80xf32> to vector<8x80xf32>
    %cst_75 = arith.constant 0.000000e+00 : f32
    %194 = vector.broadcast %cst_75 : f32 to vector<8x1xf32>
    %195 = vector.extract_strided_slice %191 {offsets = [0, 0], sizes = [8, 10], strides = [1, 1]} : vector<8x80xf32> to vector<8x10xf32>
    %196 = vector.extract_strided_slice %192 {offsets = [0, 0], sizes = [8, 10], strides = [1, 1]} : vector<8x80xf32> to vector<8x10xf32>
    %197 = vector.extract_strided_slice %193 {offsets = [0, 0], sizes = [8, 10], strides = [1, 1]} : vector<8x80xf32> to vector<8x10xf32>
    %cst_76 = arith.constant dense<0.000000e+00> : vector<8x8xf32>
    %198 = tpu.matmul %195, %196, %cst_76 {dimension_numbers = #tpu.dot_dimension_numbers<[1], [1], [0], [0], [0, 0, 1, 0], [], []>} : vector<8x10xf32>, vector<8x10xf32>, vector<8x8xf32> -> vector<8x8xf32>
    %cst_77 = arith.constant dense<0xFF800000> : vector<8xf32>
    %199 = vector.multi_reduction <maximumf>, %198, %cst_77 [1] : vector<8x8xf32> to vector<8xf32>
    %200 = vector.shape_cast %199 : vector<8xf32> to vector<8x1xf32>
    %201 = vector.broadcast %200 : vector<8x1xf32> to vector<8x8xf32>
    %202 = arith.subf %198, %201 : vector<8x8xf32>
    %203 = math.exp %202 : vector<8x8xf32>
    %cst_78 = arith.constant dense<0.000000e+00> : vector<8xf32>
    %204 = vector.multi_reduction <add>, %203, %cst_78 [1] : vector<8x8xf32> to vector<8xf32>
    %205 = vector.shape_cast %204 : vector<8xf32> to vector<8x1xf32>
    %206 = tpu.reciprocal %205 : vector<8x1xf32> -> vector<8x1xf32>
    %207 = vector.broadcast %206 : vector<8x1xf32> to vector<8x8xf32>
    %208 = arith.mulf %203, %207 : vector<8x8xf32>
    %cst_79 = arith.constant dense<0.000000e+00> : vector<8x10xf32>
    %209 = tpu.matmul %208, %197, %cst_79 {dimension_numbers = #tpu.dot_dimension_numbers<[1], [0], [0], [1], [0, 0, 1, 1], [], []>} : vector<8x8xf32>, vector<8x10xf32>, vector<8x10xf32> -> vector<8x10xf32>
    %c10_80 = arith.constant 10 : index
    %c0_81 = arith.constant 0 : index
    %210 = vector.load %arg4[%c10_80, %c0_81] : memref<12x80xf32, #tpu.memory_space<vmem>>, vector<1x10xf32>
    %cst_82 = arith.constant dense<0.000000e+00> : vector<8x1xf32>
    %211 = tpu.matmul %209, %210, %cst_82 {dimension_numbers = #tpu.dot_dimension_numbers<[1], [1], [0], [0], [0, 0, 1, 0], [], []>} : vector<8x10xf32>, vector<1x10xf32>, vector<8x1xf32> -> vector<8x1xf32>
    %212 = arith.addf %194, %211 : vector<8x1xf32>
    %213 = vector.extract_strided_slice %191 {offsets = [0, 10], sizes = [8, 10], strides = [1, 1]} : vector<8x80xf32> to vector<8x10xf32>
    %214 = vector.extract_strided_slice %192 {offsets = [0, 10], sizes = [8, 10], strides = [1, 1]} : vector<8x80xf32> to vector<8x10xf32>
    %215 = vector.extract_strided_slice %193 {offsets = [0, 10], sizes = [8, 10], strides = [1, 1]} : vector<8x80xf32> to vector<8x10xf32>
    %cst_83 = arith.constant dense<0.000000e+00> : vector<8x8xf32>
    %216 = tpu.matmul %213, %214, %cst_83 {dimension_numbers = #tpu.dot_dimension_numbers<[1], [1], [0], [0], [0, 0, 1, 0], [], []>} : vector<8x10xf32>, vector<8x10xf32>, vector<8x8xf32> -> vector<8x8xf32>
    %cst_84 = arith.constant dense<0xFF800000> : vector<8xf32>
    %217 = vector.multi_reduction <maximumf>, %216, %cst_84 [1] : vector<8x8xf32> to vector<8xf32>
    %218 = vector.shape_cast %217 : vector<8xf32> to vector<8x1xf32>
    %219 = vector.broadcast %218 : vector<8x1xf32> to vector<8x8xf32>
    %220 = arith.subf %216, %219 : vector<8x8xf32>
    %221 = math.exp %220 : vector<8x8xf32>
    %cst_85 = arith.constant dense<0.000000e+00> : vector<8xf32>
    %222 = vector.multi_reduction <add>, %221, %cst_85 [1] : vector<8x8xf32> to vector<8xf32>
    %223 = vector.shape_cast %222 : vector<8xf32> to vector<8x1xf32>
    %224 = tpu.reciprocal %223 : vector<8x1xf32> -> vector<8x1xf32>
    %225 = vector.broadcast %224 : vector<8x1xf32> to vector<8x8xf32>
    %226 = arith.mulf %221, %225 : vector<8x8xf32>
    %cst_86 = arith.constant dense<0.000000e+00> : vector<8x10xf32>
    %227 = tpu.matmul %226, %215, %cst_86 {dimension_numbers = #tpu.dot_dimension_numbers<[1], [0], [0], [1], [0, 0, 1, 1], [], []>} : vector<8x8xf32>, vector<8x10xf32>, vector<8x10xf32> -> vector<8x10xf32>
    %c10_87 = arith.constant 10 : index
    %c10_88 = arith.constant 10 : index
    %228 = vector.load %arg4[%c10_87, %c10_88] : memref<12x80xf32, #tpu.memory_space<vmem>>, vector<1x10xf32>
    %cst_89 = arith.constant dense<0.000000e+00> : vector<8x1xf32>
    %229 = tpu.matmul %227, %228, %cst_89 {dimension_numbers = #tpu.dot_dimension_numbers<[1], [1], [0], [0], [0, 0, 1, 0], [], []>} : vector<8x10xf32>, vector<1x10xf32>, vector<8x1xf32> -> vector<8x1xf32>
    %230 = arith.addf %212, %229 : vector<8x1xf32>
    %231 = vector.extract_strided_slice %191 {offsets = [0, 20], sizes = [8, 10], strides = [1, 1]} : vector<8x80xf32> to vector<8x10xf32>
    %232 = vector.extract_strided_slice %192 {offsets = [0, 20], sizes = [8, 10], strides = [1, 1]} : vector<8x80xf32> to vector<8x10xf32>
    %233 = vector.extract_strided_slice %193 {offsets = [0, 20], sizes = [8, 10], strides = [1, 1]} : vector<8x80xf32> to vector<8x10xf32>
    %cst_90 = arith.constant dense<0.000000e+00> : vector<8x8xf32>
    %234 = tpu.matmul %231, %232, %cst_90 {dimension_numbers = #tpu.dot_dimension_numbers<[1], [1], [0], [0], [0, 0, 1, 0], [], []>} : vector<8x10xf32>, vector<8x10xf32>, vector<8x8xf32> -> vector<8x8xf32>
    %cst_91 = arith.constant dense<0xFF800000> : vector<8xf32>
    %235 = vector.multi_reduction <maximumf>, %234, %cst_91 [1] : vector<8x8xf32> to vector<8xf32>
    %236 = vector.shape_cast %235 : vector<8xf32> to vector<8x1xf32>
    %237 = vector.broadcast %236 : vector<8x1xf32> to vector<8x8xf32>
    %238 = arith.subf %234, %237 : vector<8x8xf32>
    %239 = math.exp %238 : vector<8x8xf32>
    %cst_92 = arith.constant dense<0.000000e+00> : vector<8xf32>
    %240 = vector.multi_reduction <add>, %239, %cst_92 [1] : vector<8x8xf32> to vector<8xf32>
    %241 = vector.shape_cast %240 : vector<8xf32> to vector<8x1xf32>
    %242 = tpu.reciprocal %241 : vector<8x1xf32> -> vector<8x1xf32>
    %243 = vector.broadcast %242 : vector<8x1xf32> to vector<8x8xf32>
    %244 = arith.mulf %239, %243 : vector<8x8xf32>
    %cst_93 = arith.constant dense<0.000000e+00> : vector<8x10xf32>
    %245 = tpu.matmul %244, %233, %cst_93 {dimension_numbers = #tpu.dot_dimension_numbers<[1], [0], [0], [1], [0, 0, 1, 1], [], []>} : vector<8x8xf32>, vector<8x10xf32>, vector<8x10xf32> -> vector<8x10xf32>
    %c10_94 = arith.constant 10 : index
    %c20_95 = arith.constant 20 : index
    %246 = vector.load %arg4[%c10_94, %c20_95] : memref<12x80xf32, #tpu.memory_space<vmem>>, vector<1x10xf32>
    %cst_96 = arith.constant dense<0.000000e+00> : vector<8x1xf32>
    %247 = tpu.matmul %245, %246, %cst_96 {dimension_numbers = #tpu.dot_dimension_numbers<[1], [1], [0], [0], [0, 0, 1, 0], [], []>} : vector<8x10xf32>, vector<1x10xf32>, vector<8x1xf32> -> vector<8x1xf32>
    %248 = arith.addf %230, %247 : vector<8x1xf32>
    %249 = vector.extract_strided_slice %191 {offsets = [0, 30], sizes = [8, 10], strides = [1, 1]} : vector<8x80xf32> to vector<8x10xf32>
    %250 = vector.extract_strided_slice %192 {offsets = [0, 30], sizes = [8, 10], strides = [1, 1]} : vector<8x80xf32> to vector<8x10xf32>
    %251 = vector.extract_strided_slice %193 {offsets = [0, 30], sizes = [8, 10], strides = [1, 1]} : vector<8x80xf32> to vector<8x10xf32>
    %cst_97 = arith.constant dense<0.000000e+00> : vector<8x8xf32>
    %252 = tpu.matmul %249, %250, %cst_97 {dimension_numbers = #tpu.dot_dimension_numbers<[1], [1], [0], [0], [0, 0, 1, 0], [], []>} : vector<8x10xf32>, vector<8x10xf32>, vector<8x8xf32> -> vector<8x8xf32>
    %cst_98 = arith.constant dense<0xFF800000> : vector<8xf32>
    %253 = vector.multi_reduction <maximumf>, %252, %cst_98 [1] : vector<8x8xf32> to vector<8xf32>
    %254 = vector.shape_cast %253 : vector<8xf32> to vector<8x1xf32>
    %255 = vector.broadcast %254 : vector<8x1xf32> to vector<8x8xf32>
    %256 = arith.subf %252, %255 : vector<8x8xf32>
    %257 = math.exp %256 : vector<8x8xf32>
    %cst_99 = arith.constant dense<0.000000e+00> : vector<8xf32>
    %258 = vector.multi_reduction <add>, %257, %cst_99 [1] : vector<8x8xf32> to vector<8xf32>
    %259 = vector.shape_cast %258 : vector<8xf32> to vector<8x1xf32>
    %260 = tpu.reciprocal %259 : vector<8x1xf32> -> vector<8x1xf32>
    %261 = vector.broadcast %260 : vector<8x1xf32> to vector<8x8xf32>
    %262 = arith.mulf %257, %261 : vector<8x8xf32>
    %cst_100 = arith.constant dense<0.000000e+00> : vector<8x10xf32>
    %263 = tpu.matmul %262, %251, %cst_100 {dimension_numbers = #tpu.dot_dimension_numbers<[1], [0], [0], [1], [0, 0, 1, 1], [], []>} : vector<8x8xf32>, vector<8x10xf32>, vector<8x10xf32> -> vector<8x10xf32>
    %c10_101 = arith.constant 10 : index
    %c30_102 = arith.constant 30 : index
    %264 = vector.load %arg4[%c10_101, %c30_102] : memref<12x80xf32, #tpu.memory_space<vmem>>, vector<1x10xf32>
    %cst_103 = arith.constant dense<0.000000e+00> : vector<8x1xf32>
    %265 = tpu.matmul %263, %264, %cst_103 {dimension_numbers = #tpu.dot_dimension_numbers<[1], [1], [0], [0], [0, 0, 1, 0], [], []>} : vector<8x10xf32>, vector<1x10xf32>, vector<8x1xf32> -> vector<8x1xf32>
    %266 = arith.addf %248, %265 : vector<8x1xf32>
    %267 = vector.extract_strided_slice %191 {offsets = [0, 40], sizes = [8, 10], strides = [1, 1]} : vector<8x80xf32> to vector<8x10xf32>
    %268 = vector.extract_strided_slice %192 {offsets = [0, 40], sizes = [8, 10], strides = [1, 1]} : vector<8x80xf32> to vector<8x10xf32>
    %269 = vector.extract_strided_slice %193 {offsets = [0, 40], sizes = [8, 10], strides = [1, 1]} : vector<8x80xf32> to vector<8x10xf32>
    %cst_104 = arith.constant dense<0.000000e+00> : vector<8x8xf32>
    %270 = tpu.matmul %267, %268, %cst_104 {dimension_numbers = #tpu.dot_dimension_numbers<[1], [1], [0], [0], [0, 0, 1, 0], [], []>} : vector<8x10xf32>, vector<8x10xf32>, vector<8x8xf32> -> vector<8x8xf32>
    %cst_105 = arith.constant dense<0xFF800000> : vector<8xf32>
    %271 = vector.multi_reduction <maximumf>, %270, %cst_105 [1] : vector<8x8xf32> to vector<8xf32>
    %272 = vector.shape_cast %271 : vector<8xf32> to vector<8x1xf32>
    %273 = vector.broadcast %272 : vector<8x1xf32> to vector<8x8xf32>
    %274 = arith.subf %270, %273 : vector<8x8xf32>
    %275 = math.exp %274 : vector<8x8xf32>
    %cst_106 = arith.constant dense<0.000000e+00> : vector<8xf32>
    %276 = vector.multi_reduction <add>, %275, %cst_106 [1] : vector<8x8xf32> to vector<8xf32>
    %277 = vector.shape_cast %276 : vector<8xf32> to vector<8x1xf32>
    %278 = tpu.reciprocal %277 : vector<8x1xf32> -> vector<8x1xf32>
    %279 = vector.broadcast %278 : vector<8x1xf32> to vector<8x8xf32>
    %280 = arith.mulf %275, %279 : vector<8x8xf32>
    %cst_107 = arith.constant dense<0.000000e+00> : vector<8x10xf32>
    %281 = tpu.matmul %280, %269, %cst_107 {dimension_numbers = #tpu.dot_dimension_numbers<[1], [0], [0], [1], [0, 0, 1, 1], [], []>} : vector<8x8xf32>, vector<8x10xf32>, vector<8x10xf32> -> vector<8x10xf32>
    %c10_108 = arith.constant 10 : index
    %c40_109 = arith.constant 40 : index
    %282 = vector.load %arg4[%c10_108, %c40_109] : memref<12x80xf32, #tpu.memory_space<vmem>>, vector<1x10xf32>
    %cst_110 = arith.constant dense<0.000000e+00> : vector<8x1xf32>
    %283 = tpu.matmul %281, %282, %cst_110 {dimension_numbers = #tpu.dot_dimension_numbers<[1], [1], [0], [0], [0, 0, 1, 0], [], []>} : vector<8x10xf32>, vector<1x10xf32>, vector<8x1xf32> -> vector<8x1xf32>
    %284 = arith.addf %266, %283 : vector<8x1xf32>
    %285 = vector.extract_strided_slice %191 {offsets = [0, 50], sizes = [8, 10], strides = [1, 1]} : vector<8x80xf32> to vector<8x10xf32>
    %286 = vector.extract_strided_slice %192 {offsets = [0, 50], sizes = [8, 10], strides = [1, 1]} : vector<8x80xf32> to vector<8x10xf32>
    %287 = vector.extract_strided_slice %193 {offsets = [0, 50], sizes = [8, 10], strides = [1, 1]} : vector<8x80xf32> to vector<8x10xf32>
    %cst_111 = arith.constant dense<0.000000e+00> : vector<8x8xf32>
    %288 = tpu.matmul %285, %286, %cst_111 {dimension_numbers = #tpu.dot_dimension_numbers<[1], [1], [0], [0], [0, 0, 1, 0], [], []>} : vector<8x10xf32>, vector<8x10xf32>, vector<8x8xf32> -> vector<8x8xf32>
    %cst_112 = arith.constant dense<0xFF800000> : vector<8xf32>
    %289 = vector.multi_reduction <maximumf>, %288, %cst_112 [1] : vector<8x8xf32> to vector<8xf32>
    %290 = vector.shape_cast %289 : vector<8xf32> to vector<8x1xf32>
    %291 = vector.broadcast %290 : vector<8x1xf32> to vector<8x8xf32>
    %292 = arith.subf %288, %291 : vector<8x8xf32>
    %293 = math.exp %292 : vector<8x8xf32>
    %cst_113 = arith.constant dense<0.000000e+00> : vector<8xf32>
    %294 = vector.multi_reduction <add>, %293, %cst_113 [1] : vector<8x8xf32> to vector<8xf32>
    %295 = vector.shape_cast %294 : vector<8xf32> to vector<8x1xf32>
    %296 = tpu.reciprocal %295 : vector<8x1xf32> -> vector<8x1xf32>
    %297 = vector.broadcast %296 : vector<8x1xf32> to vector<8x8xf32>
    %298 = arith.mulf %293, %297 : vector<8x8xf32>
    %cst_114 = arith.constant dense<0.000000e+00> : vector<8x10xf32>
    %299 = tpu.matmul %298, %287, %cst_114 {dimension_numbers = #tpu.dot_dimension_numbers<[1], [0], [0], [1], [0, 0, 1, 1], [], []>} : vector<8x8xf32>, vector<8x10xf32>, vector<8x10xf32> -> vector<8x10xf32>
    %c10_115 = arith.constant 10 : index
    %c50_116 = arith.constant 50 : index
    %300 = vector.load %arg4[%c10_115, %c50_116] : memref<12x80xf32, #tpu.memory_space<vmem>>, vector<1x10xf32>
    %cst_117 = arith.constant dense<0.000000e+00> : vector<8x1xf32>
    %301 = tpu.matmul %299, %300, %cst_117 {dimension_numbers = #tpu.dot_dimension_numbers<[1], [1], [0], [0], [0, 0, 1, 0], [], []>} : vector<8x10xf32>, vector<1x10xf32>, vector<8x1xf32> -> vector<8x1xf32>
    %302 = arith.addf %284, %301 : vector<8x1xf32>
    %303 = vector.extract_strided_slice %191 {offsets = [0, 60], sizes = [8, 10], strides = [1, 1]} : vector<8x80xf32> to vector<8x10xf32>
    %304 = vector.extract_strided_slice %192 {offsets = [0, 60], sizes = [8, 10], strides = [1, 1]} : vector<8x80xf32> to vector<8x10xf32>
    %305 = vector.extract_strided_slice %193 {offsets = [0, 60], sizes = [8, 10], strides = [1, 1]} : vector<8x80xf32> to vector<8x10xf32>
    %cst_118 = arith.constant dense<0.000000e+00> : vector<8x8xf32>
    %306 = tpu.matmul %303, %304, %cst_118 {dimension_numbers = #tpu.dot_dimension_numbers<[1], [1], [0], [0], [0, 0, 1, 0], [], []>} : vector<8x10xf32>, vector<8x10xf32>, vector<8x8xf32> -> vector<8x8xf32>
    %cst_119 = arith.constant dense<0xFF800000> : vector<8xf32>
    %307 = vector.multi_reduction <maximumf>, %306, %cst_119 [1] : vector<8x8xf32> to vector<8xf32>
    %308 = vector.shape_cast %307 : vector<8xf32> to vector<8x1xf32>
    %309 = vector.broadcast %308 : vector<8x1xf32> to vector<8x8xf32>
    %310 = arith.subf %306, %309 : vector<8x8xf32>
    %311 = math.exp %310 : vector<8x8xf32>
    %cst_120 = arith.constant dense<0.000000e+00> : vector<8xf32>
    %312 = vector.multi_reduction <add>, %311, %cst_120 [1] : vector<8x8xf32> to vector<8xf32>
    %313 = vector.shape_cast %312 : vector<8xf32> to vector<8x1xf32>
    %314 = tpu.reciprocal %313 : vector<8x1xf32> -> vector<8x1xf32>
    %315 = vector.broadcast %314 : vector<8x1xf32> to vector<8x8xf32>
    %316 = arith.mulf %311, %315 : vector<8x8xf32>
    %cst_121 = arith.constant dense<0.000000e+00> : vector<8x10xf32>
    %317 = tpu.matmul %316, %305, %cst_121 {dimension_numbers = #tpu.dot_dimension_numbers<[1], [0], [0], [1], [0, 0, 1, 1], [], []>} : vector<8x8xf32>, vector<8x10xf32>, vector<8x10xf32> -> vector<8x10xf32>
    %c10_122 = arith.constant 10 : index
    %c60_123 = arith.constant 60 : index
    %318 = vector.load %arg4[%c10_122, %c60_123] : memref<12x80xf32, #tpu.memory_space<vmem>>, vector<1x10xf32>
    %cst_124 = arith.constant dense<0.000000e+00> : vector<8x1xf32>
    %319 = tpu.matmul %317, %318, %cst_124 {dimension_numbers = #tpu.dot_dimension_numbers<[1], [1], [0], [0], [0, 0, 1, 0], [], []>} : vector<8x10xf32>, vector<1x10xf32>, vector<8x1xf32> -> vector<8x1xf32>
    %320 = arith.addf %302, %319 : vector<8x1xf32>
    %321 = vector.extract_strided_slice %191 {offsets = [0, 70], sizes = [8, 10], strides = [1, 1]} : vector<8x80xf32> to vector<8x10xf32>
    %322 = vector.extract_strided_slice %192 {offsets = [0, 70], sizes = [8, 10], strides = [1, 1]} : vector<8x80xf32> to vector<8x10xf32>
    %323 = vector.extract_strided_slice %193 {offsets = [0, 70], sizes = [8, 10], strides = [1, 1]} : vector<8x80xf32> to vector<8x10xf32>
    %cst_125 = arith.constant dense<0.000000e+00> : vector<8x8xf32>
    %324 = tpu.matmul %321, %322, %cst_125 {dimension_numbers = #tpu.dot_dimension_numbers<[1], [1], [0], [0], [0, 0, 1, 0], [], []>} : vector<8x10xf32>, vector<8x10xf32>, vector<8x8xf32> -> vector<8x8xf32>
    %cst_126 = arith.constant dense<0xFF800000> : vector<8xf32>
    %325 = vector.multi_reduction <maximumf>, %324, %cst_126 [1] : vector<8x8xf32> to vector<8xf32>
    %326 = vector.shape_cast %325 : vector<8xf32> to vector<8x1xf32>
    %327 = vector.broadcast %326 : vector<8x1xf32> to vector<8x8xf32>
    %328 = arith.subf %324, %327 : vector<8x8xf32>
    %329 = math.exp %328 : vector<8x8xf32>
    %cst_127 = arith.constant dense<0.000000e+00> : vector<8xf32>
    %330 = vector.multi_reduction <add>, %329, %cst_127 [1] : vector<8x8xf32> to vector<8xf32>
    %331 = vector.shape_cast %330 : vector<8xf32> to vector<8x1xf32>
    %332 = tpu.reciprocal %331 : vector<8x1xf32> -> vector<8x1xf32>
    %333 = vector.broadcast %332 : vector<8x1xf32> to vector<8x8xf32>
    %334 = arith.mulf %329, %333 : vector<8x8xf32>
    %cst_128 = arith.constant dense<0.000000e+00> : vector<8x10xf32>
    %335 = tpu.matmul %334, %323, %cst_128 {dimension_numbers = #tpu.dot_dimension_numbers<[1], [0], [0], [1], [0, 0, 1, 1], [], []>} : vector<8x8xf32>, vector<8x10xf32>, vector<8x10xf32> -> vector<8x10xf32>
    %c10_129 = arith.constant 10 : index
    %c70_130 = arith.constant 70 : index
    %336 = vector.load %arg4[%c10_129, %c70_130] : memref<12x80xf32, #tpu.memory_space<vmem>>, vector<1x10xf32>
    %cst_131 = arith.constant dense<0.000000e+00> : vector<8x1xf32>
    %337 = tpu.matmul %335, %336, %cst_131 {dimension_numbers = #tpu.dot_dimension_numbers<[1], [1], [0], [0], [0, 0, 1, 0], [], []>} : vector<8x10xf32>, vector<1x10xf32>, vector<8x1xf32> -> vector<8x1xf32>
    %338 = arith.addf %320, %337 : vector<8x1xf32>
    %339 = vector.broadcast %40 : vector<1x1xf32> to vector<8x1xf32>
    %340 = arith.addf %338, %339 : vector<8x1xf32>
    %341 = tpu.concatenate %190, %340 in 0 : vector<8x1xf32>, vector<8x1xf32> -> vector<16x1xf32>
    %c0_132 = arith.constant 0 : index
    %c0_133 = arith.constant 0 : index
    %342 = vector.load %arg5[%c0_132, %c0_133] : memref<16x1xf32, #tpu.memory_space<vmem>>, vector<16x1xf32>
    tpu.vector_store %arg5[%c0_132, %c0_133], %341 {strides = array<i32>} : memref<16x1xf32, #tpu.memory_space<vmem>>, vector<16x1xf32>,
    return
  }
  func.func @transform_0(%arg0: i32) -> (i32, i32) {
    %c0_i32 = arith.constant 0 : i32
    %c0_i32_0 = arith.constant 0 : i32
    return %arg0, %c0_i32 : i32, i32
  }
  func.func @transform_1(%arg0: i32) -> (i32, i32) {
    %c0_i32 = arith.constant 0 : i32
    %c0_i32_0 = arith.constant 0 : i32
    return %arg0, %c0_i32 : i32, i32
  }
  func.func @transform_2(%arg0: i32) -> (i32, i32, i32) {
    %c0_i32 = arith.constant 0 : i32
    %c0_i32_0 = arith.constant 0 : i32
    %c0_i32_1 = arith.constant 0 : i32
    %c0_i32_2 = arith.constant 0 : i32
    return %c0_i32, %c0_i32_0, %c0_i32_1 : i32, i32, i32
  }
  func.func @transform_3(%arg0: i32) -> (i32, i32) {
    %c0_i32 = arith.constant 0 : i32
    %c0_i32_0 = arith.constant 0 : i32
    %c0_i32_1 = arith.constant 0 : i32
    return %c0_i32, %c0_i32_0 : i32, i32
  }
  func.func @transform_4(%arg0: i32) -> (i32, i32) {
    %c0_i32 = arith.constant 0 : i32
    %c0_i32_0 = arith.constant 0 : i32
    return %arg0, %c0_i32 : i32, i32
  }
}

</mosaic_0001>

<bundles_post_ra>
// kernel: tpu_custom_call.1
= control target key start
LH: loop header
LB: loop body
LE: loop exit
PB: predicated region body
PF: predicated region fallthrough
CT: control target
= control target key end

     0   :  { %9 = vsyncpa [#allocation3], 0  ;;  %s3731_s15 = smov [#allocation2]   ;;  %s4344_s0 = inlined_call_operand.vmem [shape: f32[32,4], index: 0, kind: input, shape index: {}]   ;;  %s4345_s1 = inlined_call_operand.vmem [shape: f32[16,1], index: 1, kind: input, shape index: {}]   ;;  %s4346_s2 = inlined_call_operand.hbm [shape: f32[3,80,80], index: 2, kind: input, shape index: {}]   ;;  %s4347_s3 = inlined_call_operand.vmem [shape: f32[12,80], index: 3, kind: input, shape index: {}]   ;;  %s4348_s4 = inlined_call_operand.vmem [shape: f32[16,1], index: 4, kind: output, shape index: {}]  }
   0x1   :  { %s19_s16 = sshll.u32 %s3731_s15, 4  ;;  %s20_s16 = int_to_ptr.vmem [resolvable:$true] %s19_s16 }
   0x2   :  { %s3717_s17 = scalar_lea.vmem %s20_s16, 3840  ;;  %p3722_p1 = scmp.lt.s32.totalorder %s20_s16, %s20_s16 }
   0x3   :  { %p3718_p0 = scmp.ne.s32.totalorder %s20_s16, %s3717_s17  ;;  %p3723_p2 = scmp.lt.s32.totalorder %s3717_s17, %s3717_s17 }
   0x5   :  { %p3724_p3 = por %p3723_p2, %p3722_p1 }
   0x7   :  { %p3725_p4 = pnand %p3724_p3, %p3718_p0 }
   0x9   :  { %3728 = shalt.err (!%p3725_p4)
}
   0xa   :  { %s3732_s18 = smov 128   ;;  %s3733_s19 = smov 8  }
   0xb   :  { %25 = dma.hbm_to_vmem [thread:$0]  %s4346_s2, 3840, %s20_s16, [#allocation3], %s3732_s18, %s3732_s18, %s3733_s19  }
   0xc   :  { %3729 = dma.done.wait [#allocation3], 3840  }
   0xd   :  { %3730 = vsyncadd [#allocation3], 4294963456  ;;  %vm54_vm0 = vcmask 1043456   ;;  %vm41_vm1 = vcmask 31744   ;;  %v35_v0 = vld [vmem:[%s4347_s3] sm:$0xf] }
   0xe   :  { %v31_v1 = vld [vmem:[%s4344_s0] sm:$0xff]  ;;  %v32_v2 = vld [vmem:[%s4344_s0 + $0x8] sm:$0xff]  ;;  %3394 = vmatprep.subr.msk.mxu0 %vm54_vm0, %v35_v0  ;;  %v33_v3 = vld [vmem:[%s4344_s0 + $0x10] sm:$0xff]  ;;  %v3734_v26 = vmov 0   ;;  %vm190_vm2 = vcmask 654336   ;;  %v3735_v41 = vmov 0.0  }
   0xf   :  { %3396 = vmatprep.mubr.msk.f32.mxu0 %vm41_vm1, %v31_v1  ;;  %v184_v4 = vld [vmem:[#allocation2 + $0x48] sm:$0xff]  ;;  %3395 = vmatpush3.msk.msra.mxu0 %vm54_vm0, %v35_v0  ;;  %v183_v5 = vld [vmem:[#allocation2 + $0x40] sm:$0xff]  ;;  %v284_v6 = vld [vmem:[#allocation2 + $0x98] sm:$0xff]  ;;  %vm3736_vm3 = vmmov 0   ;;  %vm469_vm4 = vcmask 80896   ;;  %s3737_s17 = smov 118  }
  0x10   :  { %3402 = vmatprep.subr.mxu1 %v184_v4  ;;  %3397 = vmatmul.mubr.msk.f32.vlgmr.msra.gmra.mxu0 %vm41_vm1, %v32_v2  ;;  %v182_v7 = vld [vmem:[#allocation2 + $0x38] sm:$0xff]  ;;  %v181_v9 = vld [vmem:[#allocation2 + $0x30] sm:$0xff]  ;;  %v180_v11 = vld [vmem:[#allocation2 + $0x28] sm:$0xff]  ;;  %vm546_vm5 = vcmask 64512   ;;  %s3738_s22 = smov 108   ;;  %s3739_s23 = smov 98  }
  0x11   :  { %3403 = vmatpush3.msra.mxu1 %v184_v4  ;;  %3399 = vmatprep.mubr.msk.f32.mxu0 %vm41_vm1, %v33_v3  ;;  %v34_v8 = vld [vmem:[%s4344_s0 + $0x18] sm:$0xff]  ;;  %v283_v10 = vld [vmem:[#allocation2 + $0x90] sm:$0xff]  ;;  %v282_v12 = vld [vmem:[#allocation2 + $0x88] sm:$0xff]  ;;  %s3740_s24 = smov 88   ;;  %s3741_s25 = smov 78   ;;  %vm3214_vm6 = vcmask 7168  }
  0x12   :  { %3404 = vmatprep.subr.mxu1 %v183_v5  ;;  %3425 = vmatprep.subr.mxu0 %v284_v6  ;;  %v179_v13 = vld [vmem:[#allocation2 + $0x20] sm:$0xff]  ;;  %v178_v15 = vld [vmem:[#allocation2 + $0x18] sm:$0xff]  ;;  %v177_v17 = vld [vmem:[#allocation2 + $0x10] sm:$0xff]  ;;  %s3742_s26 = smov 68   ;;  %s3743_s27 = smov 58  }
  0x13   :  { %3405 = vmatpush3.msra.mxu1 %v183_v5  ;;  %3426 = vmatpush3.msra.mxu0 %v284_v6  ;;  %v281_v14 = vld [vmem:[#allocation2 + $0x80] sm:$0xff]  ;;  %v280_v16 = vld [vmem:[#allocation2 + $0x78] sm:$0xff]  ;;  %v279_v18 = vld [vmem:[#allocation2 + $0x70] sm:$0xff] }
  0x14   :  { %3406 = vmatprep.subr.mxu1 %v182_v7  ;;  %3400 = vmatmul.mubr.msk.f32.gmra.mxu0 %vm41_vm1, %v34_v8  ;;  %v176_v19 = vld [vmem:[#allocation2 + $0x8] sm:$0xff]  ;;  %v175_v21 = vld [vmem:[#allocation2] sm:$0xff]  ;;  %v276_v23 = vld [vmem:[#allocation2 + $0x58] sm:$0xff] }
  0x15   :  { %3407 = vmatpush3.msra.mxu1 %v182_v7  ;;  %3427 = vmatprep.subr.mxu0 %v283_v10  ;;  %v278_v20 = vld [vmem:[#allocation2 + $0x68] sm:$0xff]  ;;  %v277_v22 = vld [vmem:[#allocation2 + $0x60] sm:$0xff]  ;;  %v275_v24 = vld [vmem:[#allocation2 + $0x50] sm:$0xff] }
  0x16   :  { %3408 = vmatprep.subr.mxu1 %v181_v9  ;;  %3428 = vmatpush3.msra.mxu0 %v283_v10  ;;  %v147_v25 = vld [vmem:[%s4345_s1] sm:$0xff]  ;;  %v148_v27 = vld [vmem:[%s4345_s1 + $0x8] sm:$0xff]  ;;  %v379_v0 = vld [vmem:[#allocation2 + $0xd8] sm:$0xff] }
  0x17   :  { %3409 = vmatpush3.msra.mxu1 %v181_v9  ;;  %3429 = vmatprep.subr.mxu0 %v282_v12  ;;  %v3222_v28 = vld [vmem:[%s4347_s3 + $0x5] ss:$0 sm:$0xff]  ;;  %v3228_v42 = vld [vmem:[%s4347_s3 + $0x4] ss:$0 sm:$0xff]  ;;  %v3229_v43 = vld [vmem:[%s4347_s3 + $0x6] ss:$0 sm:$0xff] }
  0x18   :  { %3410 = vmatprep.subr.mxu1 %v180_v11  ;;  %3430 = vmatpush3.msra.mxu0 %v282_v12  ;;  %v3230_v51 = vld [vmem:[%s4347_s3 + $0x7] ss:$0 sm:$0xff]  ;;  %v3233_v54 = vld [vmem:[%s4347_s3 + $0x8] ss:$0 sm:$0xff]  ;;  %v378_v1 = vld [vmem:[#allocation2 + $0xd0] sm:$0xff] }
  0x19   :  { %3411 = vmatpush3.msra.mxu1 %v180_v11  ;;  %3431 = vmatprep.subr.mxu0 %v281_v14  ;;  %v381_v62 = vld [vmem:[#allocation2 + $0xe8] sm:$0xff]  ;;  %v380_v63 = vld [vmem:[#allocation2 + $0xe0] sm:$0xff]  ;;  %v375_v4 = vld [vmem:[#allocation2 + $0xb8] sm:$0xff] }
  0x1a   :  { %3412 = vmatprep.subr.mxu1 %v179_v13  ;;  %3432 = vmatpush3.msra.mxu0 %v281_v14  ;;  %v377_v2 = vld [vmem:[#allocation2 + $0xc8] sm:$0xff]  ;;  %v376_v3 = vld [vmem:[#allocation2 + $0xc0] sm:$0xff]  ;;  %v374_v5 = vld [vmem:[#allocation2 + $0xb0] sm:$0xff] }
  0x1b   :  { %3413 = vmatpush3.msra.mxu1 %v179_v13  ;;  %3433 = vmatprep.subr.mxu0 %v280_v16  ;;  %v373_v6 = vld [vmem:[#allocation2 + $0xa8] sm:$0xff]  ;;  %v372_v7 = vld [vmem:[#allocation2 + $0xa0] sm:$0xff] }
  0x1c   :  { %3414 = vmatprep.subr.mxu1 %v178_v15  ;;  %3434 = vmatpush3.msra.mxu0 %v280_v16 }
  0x1d   :  { %3415 = vmatpush3.msra.mxu1 %v178_v15  ;;  %3435 = vmatprep.subr.mxu0 %v279_v18 }
  0x1e   :  { %3416 = vmatprep.subr.mxu1 %v177_v17  ;;  %3436 = vmatpush3.msra.mxu0 %v279_v18  ;;  %v3236_v18 = vld [vmem:[%s4347_s3 + $0x9] ss:$0 sm:$0xff] }
  0x1f   :  { %3417 = vmatpush3.msra.mxu1 %v177_v17  ;;  %3437 = vmatprep.subr.mxu0 %v278_v20 }
  0x20   :  { %3418 = vmatprep.subr.mxu1 %v176_v19  ;;  %3438 = vmatpush3.msra.mxu0 %v278_v20 }
  0x21   :  { %3419 = vmatpush3.msra.mxu1 %v176_v19  ;;  %3439 = vmatprep.subr.mxu0 %v277_v22 }
  0x22   :  { %3420 = vmatprep.subr.mxu1 %v175_v21  ;;  %3440 = vmatpush3.msra.mxu0 %v277_v22  ;;  %v3857_v22 = vld [vmem:[%s4347_s3 + $0xa] ss:$0 sm:$0xff] }
  0x23   :  { %3421 = vmatpush3.msra.mxu1 %v175_v21  ;;  %3441 = vmatprep.subr.mxu0 %v276_v23 }
  0x24   :  { %3442 = vmatpush3.msra.mxu0 %v276_v23  ;;  %3644 = vset.pattern.permute.xlu0 %v3734_v26 }
  0x25   :  { %3443 = vmatprep.subr.mxu0 %v275_v24  ;;  %152 = vperm.xlu0 %3644, %v147_v25  }
  0x26   :  { %3444 = vmatpush3.msra.mxu0 %v275_v24  ;;  %3448 = vmatprep.subr.mxu1 %v381_v62 }
  0x27   :  { %3471 = vmatprep.subr.mxu0 %v3735_v41 }
  0x29   :  { %157 = vperm.xlu0 %3644, %v148_v27  }
  0xa0   :  { %v153_v44 = vpop.permute.xlu0 %152 }
  0xa1   :  { %v164_v45 = vmul.f32 %v3228_v42, %v153_v44 }
  0xa3   :  { %v171_v46 = vadd.f32 %v3229_v43, %v164_v45 }
  0xa4   :  { %v158_v47 = vpop.permute.xlu0 %157 }
  0xa5   :  { %v173_v48 = vmax.f32 %v171_v46, 0.0  ;;  %v165_v49 = vmul.f32 %v3228_v42, %v158_v47 }
  0xa7   :  { %v172_v50 = vadd.f32 %v3229_v43, %v165_v49 }
  0xa9   :  { %v174_v8 = vmax.f32 %v172_v50, 0.0 }
  0xd0   :  { %v3398_v29 = vpop.f32.mrf.mxu0 }
  0xd1   :  { %v130_v30 = vadd.f32 %v3398_v29, %v3222_v28 }
  0xd2   :  { %v124_v31 = vpop.f32.mrf.mxu0 }
  0xd3   :  { %v125_v32 = vadd.f32 %v3222_v28, %v124_v31  ;;  %v144_v35 = vmax.f32 %v130_v30, 0.0 }
  0xd4   :  { %v3401_v33 = vpop.f32.mrf.mxu0 }
  0xd5   :  { %v143_v34 = vmax.f32 %v125_v32, 0.0  ;;  %v140_v36 = vadd.f32 %v3401_v33, %v3222_v28 }
  0xd6   :  { %v134_v37 = vpop.f32.mrf.mxu0 }
  0xd7   :  { %v135_v38 = vadd.f32 %v3222_v28, %v134_v37  ;;  %3422 = vmatprep.mubr.msk.f32.mxu1 %vm190_vm2, %v143_v34  ;;  %v146_v40 = vmax.f32 %v140_v36, 0.0 }
  0xd8   :  { %3423 = vmatmul.mubr.msk.f32.vlgmr.msra.gmra.mxu1 %vm190_vm2, %v144_v35 }
  0xd9   :  { %v145_v39 = vmax.f32 %v135_v38, 0.0  ;;  %3468 = vmatprep.mubr.msk.f32.mxu1 %vm190_vm2, %v173_v48  ;;  %3449 = vmatpush3.msra.mxu1 %v381_v62 }
  0xda   :  { %3450 = vmatprep.subr.mxu1 %v380_v63 }
  0xdb   :  { %3445 = vmatprep.mubr.msk.f32.mxu0 %vm190_vm2, %v145_v39  ;;  %3451 = vmatpush3.msra.mxu1 %v380_v63 }
  0xdc   :  { %3446 = vmatmul.mubr.msk.f32.vlgmr.msra.gmra.mxu0 %vm190_vm2, %v146_v40  ;;  %3452 = vmatprep.subr.mxu1 %v379_v0 }
  0xdd   :  { %3473 = vmatprep.mubr.msk.f32.mxu0 %vm3736_vm3, %v3735_v41  ;;  %3453 = vmatpush3.msra.mxu1 %v379_v0 }
  0xde   :  { %3454 = vmatprep.subr.mxu1 %v378_v1 }
  0xdf   :  { %3455 = vmatpush3.msra.mxu1 %v378_v1 }
  0xe0   :  { %3456 = vmatprep.subr.mxu1 %v377_v2 }
  0xe1   :  { %3457 = vmatpush3.msra.mxu1 %v377_v2 }
  0xe2   :  { %3458 = vmatprep.subr.mxu1 %v376_v3 }
  0xe3   :  { %3459 = vmatpush3.msra.mxu1 %v376_v3 }
  0xe4   :  { %3460 = vmatprep.subr.mxu1 %v375_v4 }
  0xe5   :  { %3461 = vmatpush3.msra.mxu1 %v375_v4 }
  0xe6   :  { %3462 = vmatprep.subr.mxu1 %v374_v5 }
  0xe7   :  { %3463 = vmatpush3.msra.mxu1 %v374_v5 }
  0xe8   :  { %3464 = vmatprep.subr.mxu1 %v373_v6 }
  0xe9   :  { %3465 = vmatpush3.msra.mxu1 %v373_v6 }
  0xea   :  { %3466 = vmatprep.subr.mxu1 %v372_v7 }
  0xeb   :  { %3467 = vmatpush3.msra.mxu1 %v372_v7 }
  0xec   :  { %3469 = vmatmul.mubr.msk.f32.vlgmr.msra.gmra.mxu1 %vm190_vm2, %v174_v8  ;;  %3496 = vmatprep.subr.mxu1 %v3735_v41 }
  0xed   :  { %3498 = vmatprep.mubr.msk.f32.mxu1 %vm3736_vm3, %v3735_v41 }
 0x198   :  { %v3424_v52 = vpop.f32.mrf.mxu1 }
 0x199   :  { %v3817_v53 = vadd.f32 %v3424_v52, %v3230_v51 }
 0x19a   :  { %v263_v55 = vpop.f32.mrf.mxu1 }
 0x19b   :  { %v264_v58 = vadd.f32 %v3230_v51, %v263_v55  ;;  %v3889_v35 = vmul.f32 0.31622776, %v3817_v53 }
 0x19c   :  { %v3447_v56 = vpop.f32.mrf.mxu0 }
 0x19d   :  { %v3822_v57 = vadd.f32 %v3447_v56, %v3233_v54  ;;  %v3830_v61 = vmul.f32 0.31622776, %v264_v58 }
 0x19e   :  { %v362_v59 = vpop.f32.mrf.mxu0 }
 0x19f   :  { %v3824_v60 = vadd.f32 %v3233_v54, %v362_v59 }
 0x1a1   :  { %634 = vrot.lane.b32.xlu0 %v3824_v60, %s3737_s17  ;;  %3472 = vmatpush3.xpose.msk.msra.mxu0 %vm469_vm4, %v3824_v60 }
 0x1a2   :  { %3476 = vmatprep.subr.mxu0 %v3735_v41 }
 0x1a4   :  { %3474 = vmatmul.mubr.msk.f32.vlgmr.msra.gmra.mxu0 %vm469_vm4, %v3830_v61 }
 0x1a5   :  { %3478 = vmatprep.mubr.msk.f32.mxu0 %vm3736_vm3, %v3735_v41 }
 0x1ac   :  { %v3470_v17 = vpop.f32.mrf.mxu1 }
 0x1ad   :  { %v3846_v19 = vadd.f32 %v3470_v17, %v3236_v18 }
 0x1ae   :  { %v459_v20 = vpop.f32.mrf.mxu1 }
 0x1af   :  { %v3848_v21 = vadd.f32 %v3236_v18, %v459_v20 }
 0x1b1   :  { %3477 = vmatpush3.msra.mxu0 %v3848_v21 }
 0x1b2   :  { %3481 = vmatprep.subr.mxu0 %v3735_v41 }
 0x213   :  { %v635_v26 = vpop.permute.xlu0 %634 }
 0x264   :  { %v542_v9 = vpop.f32.mrf.mxu0 }
 0x265   :  { %v547_v10 = vsel %vm546_vm5, %v542_v9, -inf }
 0x266   :  { %548 = vmax.xlane.f32.xlu1 %v547_v10  ;;  %v3475_v11 = vpop.f32.mrf.mxu0 }
 0x2ef   :  { %v549_v12 = vpop.xlane.xlu1 %548 }
 0x2f0   :  { %v550_v13 = vsub.f32 %v542_v9, %v549_v12 }
 0x2f2   :  { %v551_v14 = vmul.f32 1.442695, %v550_v13 }
 0x2f4   :  { %3645 = vpow2.f32 %v551_v14 }
 0x301   :  { %v3646_v15 = vpop.eup %3645 }
 0x302   :  { %v553_v16 = vsel %vm546_vm5, %v3646_v15, 0.0 }
 0x303   :  { %554 = vadd.xlane.f32.xlu1 %v553_v16 }
 0x314   :  { %632 = vrot.lane.b32.xlu1 %v3830_v61, %s3737_s17 }
 0x318   :  { %803 = vrot.lane.b32.xlu1 %v3857_v22, %s3737_s17 }
 0x38c   :  { %v555_v23 = vpop.xlane.xlu1 %554 }
 0x38d   :  { %3647 = vrcp.f32 %v555_v23 }
 0x390   :  { %v633_v27 = vpop.permute.xlu1 %632 }
 0x394   :  { %v3974_v53 = vpop.permute.xlu1 %803 }
 0x39a   :  { %v3648_v24 = vpop.eup %3647 }
 0x39b   :  { %v557_v25 = vmul.f32 %v3648_v24, %v3646_v15 }
 0x39d   :  { %3479 = vmatmul.mubr.msk.f32.vlgmr.msra.gmra.mxu0 %vm546_vm5, %v557_v25 }
 0x39e   :  { %3482 = vmatpush3.xpose.msk.msra.mxu0 %vm469_vm4, %v635_v26  ;;  %3483 = vmatprep.mubr.msk.f32.mxu0 %vm3736_vm3, %v3735_v41 }
 0x39f   :  { %3486 = vmatprep.subr.mxu0 %v3735_v41 }
 0x3a1   :  { %3484 = vmatmul.mubr.msk.f32.vlgmr.msra.gmra.mxu0 %vm469_vm4, %v633_v27 }
 0x3a2   :  { %3488 = vmatprep.mubr.msk.f32.mxu0 %vm3736_vm3, %v3735_v41 }
 0x45d   :  { %v627_v28 = vpop.f32.mrf.mxu0 }
 0x45e   :  { %v810_v29 = vmul.f32 %v3857_v22, %v627_v28 }
 0x45f   :  { %v3480_v30 = vpop.f32.mrf.mxu0 }
 0x460   :  { %v811_v31 = vsel %vm469_vm4, %v810_v29, 0.0 }
 0x461   :  { %812 = vadd.xlane.f32.xlu1 %v811_v31  ;;  %v706_v32 = vpop.f32.mrf.mxu0 }
 0x462   :  { %v710_v33 = vsel %vm546_vm5, %v706_v32, -inf }
 0x463   :  { %711 = vmax.xlane.f32.xlu0 %v710_v33  ;;  %v3485_v34 = vpop.f32.mrf.mxu0 }
 0x472   :  { %817 = vrot.lane.b32.xlu1 %v3824_v60, %s3738_s22 }
 0x476   :  { %990 = vrot.lane.b32.xlu1 %v3824_v60, %s3739_s23 }
 0x479   :  { %722 = vrot.lane.b32.xlu0 %v3848_v21, %s3737_s17 }
 0x47a   :  { %988 = vrot.lane.b32.xlu1 %v3830_v61, %s3739_s23 }
 0x47d   :  { %815 = vrot.lane.b32.xlu0 %v3830_v61, %s3738_s22 }
 0x47e   :  { %1163 = vrot.lane.b32.xlu1 %v3824_v60, %s3740_s24 }
 0x481   :  { %1334 = vrot.lane.b32.xlu0 %v3830_v61, %s3741_s25 }
 0x482   :  { %1161 = vrot.lane.b32.xlu1 %v3830_v61, %s3740_s24 }
 0x485   :  { %2018 = vrot.lane.b32.xlu0 %v3889_v35, %s3737_s17 }
 0x489   :  { %2193 = vrot.lane.b32.xlu0 %v3889_v35, %s3738_s22 }
 0x48d   :  { %2363 = vrot.lane.b32.xlu0 %v3889_v35, %s3739_s23 }
 0x491   :  { %2533 = vrot.lane.b32.xlu0 %v3889_v35, %s3740_s24 }
 0x495   :  { %2703 = vrot.lane.b32.xlu0 %v3889_v35, %s3741_s25 }
 0x499   :  { %2873 = vrot.lane.b32.xlu0 %v3889_v35, %s3742_s26 }
 0x49d   :  { %3043 = vrot.lane.b32.xlu0 %v3889_v35, %s3743_s27 }
 0x4a1   :  { %904 = vrot.lane.b32.xlu0 %v3848_v21, %s3738_s22 }
 0x4a5   :  { %980 = vrot.lane.b32.xlu0 %v3857_v22, %s3738_s22 }
 0x4a9   :  { %1077 = vrot.lane.b32.xlu0 %v3848_v21, %s3739_s23 }
 0x4ad   :  { %1326 = vrot.lane.b32.xlu0 %v3857_v22, %s3740_s24 }
 0x4b1   :  { %1423 = vrot.lane.b32.xlu0 %v3848_v21, %s3741_s25 }
 0x4b5   :  { %1672 = vrot.lane.b32.xlu0 %v3857_v22, %s3742_s26 }
 0x4b9   :  { %1769 = vrot.lane.b32.xlu0 %v3848_v21, %s3743_s27 }
 0x4ea   :  { %v3976_v54 = vpop.xlane.xlu1 %812 }
 0x4ec   :  { %v712_v36 = vpop.xlane.xlu0 %711 }
 0x4ed   :  { %v713_v37 = vsub.f32 %v706_v32, %v712_v36 }
 0x4ee   :  { %v818_v55 = vpop.permute.xlu1 %817 }
 0x4ef   :  { %v714_v38 = vmul.f32 1.442695, %v713_v37 }
 0x4f0   :  { %v723_v39 = vpop.permute.xlu0 %722 }
 0x4f1   :  { %3649 = vpow2.f32 %v714_v38  ;;  %3487 = vmatpush3.msra.mxu0 %v723_v39 }
 0x4f2   :  { %3491 = vmatprep.subr.mxu0 %v3735_v41  ;;  %v991_v56 = vpop.permute.xlu1 %990 }
 0x4f4   :  { %v816_v40 = vpop.permute.xlu0 %815 }
 0x4f6   :  { %v989_v58 = vpop.permute.xlu1 %988 }
 0x4f8   :  { %v3920_v42 = vpop.permute.xlu0 %1334 }
 0x4fa   :  { %v1164_v59 = vpop.permute.xlu1 %1163 }
 0x4fc   :  { %v3922_v43 = vpop.permute.xlu0 %2018 }
 0x4fe   :  { %v3650_v44 = vpop.eup %3649 }
 0x4ff   :  { %v716_v45 = vsel %vm546_vm5, %v3650_v44, 0.0 }
 0x500   :  { %717 = vadd.xlane.f32.xlu1 %v716_v45  ;;  %v3925_v46 = vpop.permute.xlu0 %2193 }
 0x504   :  { %v3927_v47 = vpop.permute.xlu0 %2363 }
 0x508   :  { %v3929_v48 = vpop.permute.xlu0 %2533 }
 0x50c   :  { %v3931_v49 = vpop.permute.xlu0 %2703 }
 0x510   :  { %v3933_v50 = vpop.permute.xlu0 %2873 }
 0x511   :  { %1336 = vrot.lane.b32.xlu1 %v3824_v60, %s3741_s25 }
 0x514   :  { %v3937_v51 = vpop.permute.xlu0 %3043 }
 0x515   :  { %1509 = vrot.lane.b32.xlu1 %v3824_v60, %s3742_s26 }
 0x518   :  { %v905_v52 = vpop.permute.xlu0 %904 }
 0x519   :  { %1507 = vrot.lane.b32.xlu1 %v3830_v61, %s3742_s26  ;;  %3497 = vmatpush3.msra.mxu1 %v905_v52 }
 0x51a   :  { %3506 = vmatprep.subr.mxu1 %v3735_v41 }
 0x51d   :  { %1682 = vrot.lane.b32.xlu1 %v3824_v60, %s3743_s27  ;;  %v1162_v60 = vpop.permute.xlu1 %1161 }
 0x521   :  { %1680 = vrot.lane.b32.xlu1 %v3830_v61, %s3743_s27 }
 0x525   :  { %2020 = vrot.lane.b32.xlu1 %v3822_v57, %s3737_s17 }
 0x529   :  { %2195 = vrot.lane.b32.xlu1 %v3822_v57, %s3738_s22 }
 0x52d   :  { %2365 = vrot.lane.b32.xlu1 %v3822_v57, %s3739_s23 }
 0x531   :  { %2535 = vrot.lane.b32.xlu1 %v3822_v57, %s3740_s24 }
 0x535   :  { %2705 = vrot.lane.b32.xlu1 %v3822_v57, %s3741_s25 }
 0x539   :  { %2875 = vrot.lane.b32.xlu1 %v3822_v57, %s3742_s26 }
 0x53d   :  { %3045 = vrot.lane.b32.xlu1 %v3822_v57, %s3743_s27 }
 0x541   :  { %1153 = vrot.lane.b32.xlu1 %v3857_v22, %s3739_s23 }
 0x545   :  { %1250 = vrot.lane.b32.xlu1 %v3848_v21, %s3740_s24 }
 0x549   :  { %1499 = vrot.lane.b32.xlu1 %v3857_v22, %s3741_s25 }
 0x54d   :  { %1596 = vrot.lane.b32.xlu1 %v3848_v21, %s3742_s26 }
 0x551   :  { %1845 = vrot.lane.b32.xlu1 %v3857_v22, %s3743_s27 }
 0x555   :  { %2108 = vrot.lane.b32.xlu1 %v3846_v19, %s3737_s17 }
 0x589   :  { %v718_v61 = vpop.xlane.xlu1 %717 }
 0x58a   :  { %3651 = vrcp.f32 %v718_v61 }
 0x58d   :  { %v1337_v62 = vpop.permute.xlu1 %1336 }
 0x591   :  { %v1510_v63 = vpop.permute.xlu1 %1509 }
 0x595   :  { %v1508_v1 = vpop.permute.xlu1 %1507 }
 0x597   :  { %v3652_v0 = vpop.eup %3651 }
 0x598   :  { %v720_v2 = vmul.f32 %v3652_v0, %v3650_v44 }
 0x599   :  { %v1683_v3 = vpop.permute.xlu1 %1682 }
 0x59a   :  { %3489 = vmatmul.mubr.msk.f32.vlgmr.msra.gmra.mxu0 %vm546_vm5, %v720_v2 }
 0x59b   :  { %3492 = vmatpush3.xpose.msk.msra.mxu0 %vm469_vm4, %v818_v55  ;;  %3493 = vmatprep.mubr.msk.f32.mxu0 %vm3736_vm3, %v3735_v41 }
 0x59c   :  { %3501 = vmatprep.subr.mxu0 %v3735_v41 }
 0x59d   :  { %v1681_v4 = vpop.permute.xlu1 %1680 }
 0x59e   :  { %3494 = vmatmul.mubr.msk.f32.vlgmr.msra.gmra.mxu0 %vm469_vm4, %v816_v40 }
 0x59f   :  { %3502 = vmatpush3.xpose.msk.msra.mxu0 %vm469_vm4, %v991_v56  ;;  %3503 = vmatprep.mubr.msk.f32.mxu0 %vm3736_vm3, %v3735_v41 }
 0x5a0   :  { %3511 = vmatprep.subr.mxu0 %v3735_v41 }
 0x5a1   :  { %v2021_v5 = vpop.permute.xlu1 %2020 }
 0x5a2   :  { %3504 = vmatmul.mubr.msk.f32.vlgmr.msra.gmra.mxu0 %vm469_vm4, %v989_v58 }
 0x5a3   :  { %3512 = vmatpush3.xpose.msk.msra.mxu0 %vm469_vm4, %v1164_v59  ;;  %3513 = vmatprep.mubr.msk.f32.mxu0 %vm3736_vm3, %v3735_v41 }
 0x5a4   :  { %3521 = vmatprep.subr.mxu0 %v3735_v41 }
 0x5a5   :  { %v2196_v6 = vpop.permute.xlu1 %2195 }
 0x5a6   :  { %3514 = vmatmul.mubr.msk.f32.vlgmr.msra.gmra.mxu0 %vm469_vm4, %v1162_v60 }
 0x5a7   :  { %3522 = vmatpush3.xpose.msk.msra.mxu0 %vm469_vm4, %v1337_v62  ;;  %3523 = vmatprep.mubr.msk.f32.mxu0 %vm3736_vm3, %v3735_v41 }
 0x5a8   :  { %3531 = vmatprep.subr.mxu0 %v3735_v41 }
 0x5a9   :  { %v2366_v7 = vpop.permute.xlu1 %2365 }
 0x5aa   :  { %3524 = vmatmul.mubr.msk.f32.vlgmr.msra.gmra.mxu0 %vm469_vm4, %v3920_v42 }
 0x5ab   :  { %3532 = vmatpush3.xpose.msk.msra.mxu0 %vm469_vm4, %v1510_v63  ;;  %3533 = vmatprep.mubr.msk.f32.mxu0 %vm3736_vm3, %v3735_v41  ;;  %v4120_v63 = vpop.permute.xlu0 %980 }
 0x5ac   :  { %3541 = vmatprep.subr.mxu0 %v3735_v41 }
 0x5ae   :  { %3534 = vmatmul.mubr.msk.f32.vlgmr.msra.gmra.mxu0 %vm469_vm4, %v1508_v1 }
 0x5af   :  { %3542 = vmatpush3.xpose.msk.msra.mxu0 %vm469_vm4, %v1683_v3  ;;  %3543 = vmatprep.mubr.msk.f32.mxu0 %vm3736_vm3, %v3735_v41  ;;  %v4122_v0 = vpop.permute.xlu0 %1077 }
 0x5b0   :  { %3551 = vmatprep.subr.mxu0 %v3735_v41 }
 0x5b2   :  { %3544 = vmatmul.mubr.msk.f32.vlgmr.msra.gmra.mxu0 %vm469_vm4, %v1681_v4 }
 0x5b3   :  { %3552 = vmatpush3.xpose.msk.msra.mxu0 %vm469_vm4, %v3822_v57  ;;  %3553 = vmatprep.mubr.msk.f32.mxu0 %vm3736_vm3, %v3735_v41  ;;  %v2536_v57 = vpop.permute.xlu1 %2535  ;;  %v4126_v2 = vpop.permute.xlu0 %1326 }
 0x5b4   :  { %3561 = vmatprep.subr.mxu0 %v3735_v41 }
 0x5b6   :  { %3554 = vmatmul.mubr.msk.f32.vlgmr.msra.gmra.mxu0 %vm469_vm4, %v3889_v35 }
 0x5b7   :  { %3562 = vmatpush3.xpose.msk.msra.mxu0 %vm469_vm4, %v2021_v5  ;;  %3563 = vmatprep.mubr.msk.f32.mxu0 %vm3736_vm3, %v3735_v41  ;;  %v2706_v8 = vpop.permute.xlu1 %2705  ;;  %v4130_v4 = vpop.permute.xlu0 %1423 }
 0x5b8   :  { %3571 = vmatprep.subr.mxu0 %v3735_v41 }
 0x5ba   :  { %3564 = vmatmul.mubr.msk.f32.vlgmr.msra.gmra.mxu0 %vm469_vm4, %v3922_v43 }
 0x5bb   :  { %3572 = vmatpush3.xpose.msk.msra.mxu0 %vm469_vm4, %v2196_v6  ;;  %3573 = vmatprep.mubr.msk.f32.mxu0 %vm3736_vm3, %v3735_v41  ;;  %v2876_v9 = vpop.permute.xlu1 %2875  ;;  %v4134_v6 = vpop.permute.xlu0 %1672 }
 0x5bc   :  { %3581 = vmatprep.subr.mxu0 %v3735_v41 }
 0x5be   :  { %3574 = vmatmul.mubr.msk.f32.vlgmr.msra.gmra.mxu0 %vm469_vm4, %v3925_v46 }
 0x5bf   :  { %3582 = vmatpush3.xpose.msk.msra.mxu0 %vm469_vm4, %v2366_v7  ;;  %3583 = vmatprep.mubr.msk.f32.mxu0 %vm3736_vm3, %v3735_v41  ;;  %v3046_v10 = vpop.permute.xlu1 %3045 }
 0x5c0   :  { %3591 = vmatprep.subr.mxu0 %v3735_v41 }
 0x5c2   :  { %3584 = vmatmul.mubr.msk.f32.vlgmr.msra.gmra.mxu0 %vm469_vm4, %v3927_v47 }
 0x5c3   :  { %3592 = vmatpush3.xpose.msk.msra.mxu0 %vm469_vm4, %v2536_v57  ;;  %3593 = vmatprep.mubr.msk.f32.mxu0 %vm3736_vm3, %v3735_v41  ;;  %v4124_v1 = vpop.permute.xlu1 %1153  ;;  %v4138_v57 = vpop.permute.xlu0 %1769 }
 0x5c4   :  { %3601 = vmatprep.subr.mxu0 %v3735_v41 }
 0x5c6   :  { %3594 = vmatmul.mubr.msk.f32.vlgmr.msra.gmra.mxu0 %vm469_vm4, %v3929_v48 }
 0x5c7   :  { %3602 = vmatpush3.xpose.msk.msra.mxu0 %vm469_vm4, %v2706_v8  ;;  %3603 = vmatprep.mubr.msk.f32.mxu0 %vm3736_vm3, %v3735_v41  ;;  %v4128_v3 = vpop.permute.xlu1 %1250 }
 0x5c8   :  { %3611 = vmatprep.subr.mxu0 %v3735_v41 }
 0x5ca   :  { %3604 = vmatmul.mubr.msk.f32.vlgmr.msra.gmra.mxu0 %vm469_vm4, %v3931_v49 }
 0x5cb   :  { %3612 = vmatpush3.xpose.msk.msra.mxu0 %vm469_vm4, %v2876_v9  ;;  %3613 = vmatprep.mubr.msk.f32.mxu0 %vm3736_vm3, %v3735_v41  ;;  %v4132_v5 = vpop.permute.xlu1 %1499 }
 0x5cc   :  { %3621 = vmatprep.subr.mxu0 %v3735_v41 }
 0x5ce   :  { %3614 = vmatmul.mubr.msk.f32.vlgmr.msra.gmra.mxu0 %vm469_vm4, %v3933_v50 }
 0x5cf   :  { %3622 = vmatpush3.xpose.msk.msra.mxu0 %vm469_vm4, %v3046_v10  ;;  %3623 = vmatprep.mubr.msk.f32.mxu0 %vm3736_vm3, %v3735_v41  ;;  %v4136_v7 = vpop.permute.xlu1 %1596 }
 0x5d2   :  { %3624 = vmatmul.mubr.msk.f32.vlgmr.msra.gmra.mxu0 %vm469_vm4, %v3937_v51 }
 0x5d3   :  { %v4140_v8 = vpop.permute.xlu1 %1845 }
 0x5d7   :  { %v4144_v10 = vpop.permute.xlu1 %2108 }
 0x65a   :  { %v794_v11 = vpop.f32.mrf.mxu0 }
 0x65b   :  { %v806_v12 = vmul.f32 %v3974_v53, %v794_v11 }
 0x65c   :  { %v3490_v13 = vpop.f32.mrf.mxu0 }
 0x65d   :  { %v807_v14 = vsel %vm469_vm4, %v806_v12, 0.0 }
 0x65e   :  { %808 = vadd.xlane.f32.xlu0 %v807_v14  ;;  %v4060_v15 = vpop.f32.mrf.mxu0 }
 0x65f   :  { %v893_v17 = vsel %vm546_vm5, %v4060_v15, -inf }
 0x660   :  { %v3495_v16 = vpop.f32.mrf.mxu0 }
 0x662   :  { %894 = vmax.xlane.f32.xlu0 %v893_v17  ;;  %v4064_v18 = vpop.f32.mrf.mxu0 }
 0x663   :  { %v1066_v20 = vsel %vm546_vm5, %v4064_v18, -inf }
 0x664   :  { %1067 = vmax.xlane.f32.xlu1 %v1066_v20  ;;  %v3505_v21 = vpop.f32.mrf.mxu0 }
 0x666   :  { %v4068_v23 = vpop.f32.mrf.mxu0 }
 0x667   :  { %v1239_v24 = vsel %vm546_vm5, %v4068_v23, -inf }
 0x668   :  { %1240 = vmax.xlane.f32.xlu0 %v1239_v24  ;;  %v3515_v25 = vpop.f32.mrf.mxu0 }
 0x66a   :  { %v4072_v26 = vpop.f32.mrf.mxu0 }
 0x66b   :  { %v1412_v27 = vsel %vm546_vm5, %v4072_v26, -inf }
 0x66c   :  { %1413 = vmax.xlane.f32.xlu0 %v1412_v27  ;;  %v3525_v28 = vpop.f32.mrf.mxu0 }
 0x66e   :  { %v4076_v29 = vpop.f32.mrf.mxu0 }
 0x66f   :  { %v1585_v30 = vsel %vm546_vm5, %v4076_v29, -inf }
 0x670   :  { %1586 = vmax.xlane.f32.xlu0 %v1585_v30  ;;  %v3535_v31 = vpop.f32.mrf.mxu0 }
 0x672   :  { %v4080_v32 = vpop.f32.mrf.mxu0 }
 0x673   :  { %v1758_v33 = vsel %vm546_vm5, %v4080_v32, -inf }
 0x674   :  { %1759 = vmax.xlane.f32.xlu0 %v1758_v33  ;;  %v3545_v34 = vpop.f32.mrf.mxu0 }
 0x676   :  { %v4084_v35 = vpop.f32.mrf.mxu0 }
 0x677   :  { %v1934_v36 = vsel %vm546_vm5, %v4084_v35, -inf }
 0x678   :  { %1935 = vmax.xlane.f32.xlu0 %v1934_v36  ;;  %v3555_v37 = vpop.f32.mrf.mxu0 }
 0x67a   :  { %v4088_v38 = vpop.f32.mrf.mxu0 }
 0x67b   :  { %v2096_v39 = vsel %vm546_vm5, %v4088_v38, -inf }
 0x67c   :  { %2097 = vmax.xlane.f32.xlu1 %v2096_v39  ;;  %v3565_v40 = vpop.f32.mrf.mxu0 }
 0x67e   :  { %v4092_v42 = vpop.f32.mrf.mxu0 }
 0x67f   :  { %v2271_v43 = vsel %vm546_vm5, %v4092_v42, -inf }
 0x680   :  { %2272 = vmax.xlane.f32.xlu0 %v2271_v43  ;;  %v3575_v44 = vpop.f32.mrf.mxu0 }
 0x682   :  { %v4096_v45 = vpop.f32.mrf.mxu0 }
 0x683   :  { %v2441_v46 = vsel %vm546_vm5, %v4096_v45, -inf }
 0x684   :  { %2442 = vmax.xlane.f32.xlu0 %v2441_v46  ;;  %v3585_v47 = vpop.f32.mrf.mxu0 }
 0x686   :  { %v4100_v48 = vpop.f32.mrf.mxu0 }
 0x687   :  { %v2611_v49 = vsel %vm546_vm5, %v4100_v48, -inf }
 0x688   :  { %2612 = vmax.xlane.f32.xlu0 %v2611_v49  ;;  %v3595_v50 = vpop.f32.mrf.mxu0 }
 0x68a   :  { %v4104_v51 = vpop.f32.mrf.mxu0 }
 0x68b   :  { %v2781_v52 = vsel %vm546_vm5, %v4104_v51, -inf }
 0x68c   :  { %2782 = vmax.xlane.f32.xlu0 %v2781_v52  ;;  %v3605_v55 = vpop.f32.mrf.mxu0 }
 0x68e   :  { %v4108_v56 = vpop.f32.mrf.mxu0 }
 0x68f   :  { %v2951_v58 = vsel %vm546_vm5, %v4108_v56, -inf }
 0x690   :  { %2952 = vmax.xlane.f32.xlu1 %v2951_v58  ;;  %v3615_v59 = vpop.f32.mrf.mxu0 }
 0x692   :  { %v4112_v60 = vpop.f32.mrf.mxu0 }
 0x693   :  { %v3121_v61 = vsel %vm546_vm5, %v4112_v60, -inf }
 0x694   :  { %3122 = vmax.xlane.f32.xlu0 %v3121_v61  ;;  %v3625_v62 = vpop.f32.mrf.mxu0 }
 0x6a1   :  { %2452 = vrot.lane.b32.xlu1 %v3846_v19, %s3739_s23 }
 0x6aa   :  { %2282 = vrot.lane.b32.xlu0 %v3846_v19, %s3738_s22 }
 0x6e7   :  { %v4142_v9 = vpop.xlane.xlu0 %808 }
 0x6eb   :  { %v895_v11 = vpop.xlane.xlu0 %894 }
 0x6ec   :  { %v896_v12 = vsub.f32 %v4060_v15, %v895_v11 }
 0x6ed   :  { %v1068_v13 = vpop.xlane.xlu1 %1067 }
 0x6ee   :  { %v897_v14 = vmul.f32 1.442695, %v896_v12  ;;  %v1069_v16 = vsub.f32 %v4064_v18, %v1068_v13 }
 0x6f0   :  { %3653 = vpow2.f32 %v897_v14  ;;  %v1070_v17 = vmul.f32 1.442695, %v1069_v16 }
 0x6f1   :  { %v1241_v20 = vpop.xlane.xlu0 %1240 }
 0x6f2   :  { %3655 = vpow2.f32 %v1070_v17  ;;  %v1242_v21 = vsub.f32 %v4068_v23, %v1241_v20 }
 0x6f4   :  { %v1243_v24 = vmul.f32 1.442695, %v1242_v21 }
 0x6f5   :  { %v1414_v25 = vpop.xlane.xlu0 %1413 }
 0x6f6   :  { %3657 = vpow2.f32 %v1243_v24  ;;  %v1415_v27 = vsub.f32 %v4072_v26, %v1414_v25 }
 0x6f8   :  { %v1416_v28 = vmul.f32 1.442695, %v1415_v27 }
 0x6f9   :  { %v1587_v30 = vpop.xlane.xlu0 %1586 }
 0x6fa   :  { %3659 = vpow2.f32 %v1416_v28  ;;  %v1588_v15 = vsub.f32 %v4076_v29, %v1587_v30 }
 0x6fc   :  { %v1589_v31 = vmul.f32 1.442695, %v1588_v15 }
 0x6fd   :  { %v4151_v33 = vpop.eup %3653  ;;  %v1760_v18 = vpop.xlane.xlu0 %1759 }
 0x6fe   :  { %3661 = vpow2.f32 %v1589_v31  ;;  %v1761_v34 = vsub.f32 %v4080_v32, %v1760_v18  ;;  %v899_v23 = vsel %vm546_vm5, %v4151_v33, 0.0 }
 0x6ff   :  { %v4156_v36 = vpop.eup %3655  ;;  %900 = vadd.xlane.f32.xlu1 %v899_v23 }
 0x700   :  { %v1762_v37 = vmul.f32 1.442695, %v1761_v34  ;;  %v1072_v29 = vsel %vm546_vm5, %v4156_v36, 0.0 }
 0x701   :  { %v1936_v26 = vpop.xlane.xlu0 %1935 }
 0x702   :  { %3663 = vpow2.f32 %v1762_v37  ;;  %v1937_v39 = vsub.f32 %v4084_v35, %v1936_v26 }
 0x703   :  { %v4161_v40 = vpop.eup %3657  ;;  %1073 = vadd.xlane.f32.xlu1 %v1072_v29 }
 0x704   :  { %v1938_v43 = vmul.f32 1.442695, %v1937_v39  ;;  %v1245_v32 = vsel %vm546_vm5, %v4161_v40, 0.0 }
 0x705   :  { %v2098_v44 = vpop.xlane.xlu1 %2097  ;;  %1246 = vadd.xlane.f32.xlu0 %v1245_v32 }
 0x706   :  { %3665 = vpow2.f32 %v1938_v43  ;;  %v2099_v46 = vsub.f32 %v4088_v38, %v2098_v44 }
 0x707   :  { %v4166_v47 = vpop.eup %3659 }
 0x708   :  { %v2100_v49 = vmul.f32 1.442695, %v2099_v46  ;;  %v1418_v35 = vsel %vm546_vm5, %v4166_v47, 0.0 }
 0x709   :  { %v2273_v50 = vpop.xlane.xlu0 %2272  ;;  %1419 = vadd.xlane.f32.xlu1 %v1418_v35 }
 0x70a   :  { %3667 = vpow2.f32 %v2100_v49  ;;  %v2274_v52 = vsub.f32 %v4092_v42, %v2273_v50 }
 0x70b   :  { %v4171_v55 = vpop.eup %3661 }
 0x70c   :  { %v2275_v58 = vmul.f32 1.442695, %v2274_v52  ;;  %v1591_v59 = vsel %vm546_vm5, %v4171_v55, 0.0 }
 0x70d   :  { %v2443_v61 = vpop.xlane.xlu0 %2442  ;;  %1592 = vadd.xlane.f32.xlu0 %v1591_v59 }
 0x70e   :  { %3669 = vpow2.f32 %v2275_v58  ;;  %v2444_v38 = vsub.f32 %v4096_v45, %v2443_v61 }
 0x70f   :  { %v4176_v62 = vpop.eup %3663 }
 0x710   :  { %v2445_v11 = vmul.f32 1.442695, %v2444_v38  ;;  %v1764_v12 = vsel %vm546_vm5, %v4176_v62, 0.0 }
 0x711   :  { %v2613_v13 = vpop.xlane.xlu0 %2612  ;;  %1765 = vadd.xlane.f32.xlu1 %v1764_v12 }
 0x712   :  { %3671 = vpow2.f32 %v2445_v11  ;;  %v2614_v42 = vsub.f32 %v4100_v48, %v2613_v13 }
 0x713   :  { %v4181_v14 = vpop.eup %3665 }
 0x714   :  { %v2615_v16 = vmul.f32 1.442695, %v2614_v42  ;;  %v1940_v17 = vsel %vm546_vm5, %v4181_v14, 0.0 }
 0x715   :  { %v2783_v20 = vpop.xlane.xlu0 %2782  ;;  %1941 = vadd.xlane.f32.xlu0 %v1940_v17 }
 0x716   :  { %3673 = vpow2.f32 %v2615_v16  ;;  %v2784_v45 = vsub.f32 %v4104_v51, %v2783_v20 }
 0x717   :  { %v4186_v21 = vpop.eup %3667 }
 0x718   :  { %v2785_v24 = vmul.f32 1.442695, %v2784_v45  ;;  %v2102_v25 = vsel %vm546_vm5, %v4186_v21, 0.0 }
 0x719   :  { %2103 = vadd.xlane.f32.xlu0 %v2102_v25  ;;  %v2953_v34 = vpop.xlane.xlu1 %2952 }
 0x71a   :  { %3675 = vpow2.f32 %v2785_v24  ;;  %v2954_v23 = vsub.f32 %v4108_v56, %v2953_v34 }
 0x71b   :  { %v4190_v48 = vpop.eup %3669 }
 0x71c   :  { %v2277_v27 = vsel %vm546_vm5, %v4190_v48, 0.0  ;;  %v2955_v37 = vmul.f32 1.442695, %v2954_v23 }
 0x71d   :  { %2278 = vadd.xlane.f32.xlu0 %v2277_v27  ;;  %v3123_v26 = vpop.xlane.xlu0 %3122  ;;  %v4224_v56 = vpop.permute.xlu1 %2452 }
 0x71e   :  { %3677 = vpow2.f32 %v2955_v37  ;;  %v3124_v39 = vsub.f32 %v4112_v60, %v3123_v26 }
 0x71f   :  { %v4194_v28 = vpop.eup %3671 }
 0x720   :  { %v2447_v30 = vsel %vm546_vm5, %v4194_v28, 0.0  ;;  %v3125_v29 = vmul.f32 1.442695, %v3124_v39 }
 0x721   :  { %2448 = vadd.xlane.f32.xlu0 %v2447_v30  ;;  %v4226_v49 = vpop.permute.xlu0 %2282 }
 0x722   :  { %3679 = vpow2.f32 %v3125_v29 }
 0x723   :  { %v4198_v51 = vpop.eup %3673 }
 0x724   :  { %v2617_v15 = vsel %vm546_vm5, %v4198_v51, 0.0 }
 0x725   :  { %2618 = vadd.xlane.f32.xlu0 %v2617_v15 }
 0x727   :  { %v4202_v31 = vpop.eup %3675 }
 0x728   :  { %v2787_v18 = vsel %vm546_vm5, %v4202_v31, 0.0 }
 0x729   :  { %2788 = vadd.xlane.f32.xlu1 %v2787_v18 }
 0x72b   :  { %v4214_v43 = vpop.eup %3677 }
 0x72c   :  { %v2957_v32 = vsel %vm546_vm5, %v4214_v43, 0.0 }
 0x72f   :  { %v4218_v44 = vpop.eup %3679 }
 0x730   :  { %v3127_v46 = vsel %vm546_vm5, %v4218_v44, 0.0 }
 0x73a   :  { %2792 = vrot.lane.b32.xlu1 %v3846_v19, %s3741_s25 }
 0x73b   :  { %2622 = vrot.lane.b32.xlu0 %v3846_v19, %s3740_s24 }
 0x73e   :  { %2962 = vrot.lane.b32.xlu1 %v3846_v19, %s3742_s26 }
 0x75a   :  { %2958 = vadd.xlane.f32.xlu0 %v2957_v32 }
 0x762   :  { %3128 = vadd.xlane.f32.xlu1 %v3127_v46 }
 0x773   :  { %3132 = vrot.lane.b32.xlu1 %v3846_v19, %s3743_s27 }
 0x788   :  { %v901_v60 = vpop.xlane.xlu1 %900 }
 0x789   :  { %3681 = vrcp.f32 %v901_v60 }
 0x78c   :  { %v1074_v35 = vpop.xlane.xlu1 %1073 }
 0x78d   :  { %3683 = vrcp.f32 %v1074_v35 }
 0x78e   :  { %v1247_v50 = vpop.xlane.xlu0 %1246 }
 0x78f   :  { %3685 = vrcp.f32 %v1247_v50 }
 0x792   :  { %v1420_v52 = vpop.xlane.xlu1 %1419 }
 0x793   :  { %3687 = vrcp.f32 %v1420_v52 }
 0x796   :  { %v3682_v58 = vpop.eup %3681  ;;  %v1593_v59 = vpop.xlane.xlu0 %1592 }
 0x797   :  { %3689 = vrcp.f32 %v1593_v59  ;;  %v903_v61 = vmul.f32 %v3682_v58, %v4151_v33 }
 0x799   :  { %3499 = vmatmul.mubr.msk.f32.vlgmr.msra.gmra.mxu1 %vm546_vm5, %v903_v61 }
 0x79a   :  { %v3684_v38 = vpop.eup %3683  ;;  %3507 = vmatpush3.msra.mxu1 %v4122_v0  ;;  %v1766_v11 = vpop.xlane.xlu1 %1765  ;;  %3508 = vmatprep.mubr.msk.f32.mxu1 %vm3736_vm3, %v3735_v41 }
 0x79b   :  { %3691 = vrcp.f32 %v1766_v11  ;;  %3516 = vmatprep.subr.mxu1 %v3735_v41  ;;  %v1076_v12 = vmul.f32 %v3684_v38, %v4156_v36 }
 0x79c   :  { %v3686_v13 = vpop.eup %3685 }
 0x79d   :  { %3509 = vmatmul.mubr.msk.f32.vlgmr.msra.gmra.mxu1 %vm546_vm5, %v1076_v12  ;;  %v1249_v0 = vmul.f32 %v3686_v13, %v4161_v40 }
 0x79e   :  { %3517 = vmatpush3.msra.mxu1 %v4128_v3  ;;  %v1942_v33 = vpop.xlane.xlu0 %1941  ;;  %3518 = vmatprep.mubr.msk.f32.mxu1 %vm3736_vm3, %v3735_v41 }
 0x79f   :  { %3693 = vrcp.f32 %v1942_v33  ;;  %3526 = vmatprep.subr.mxu1 %v3735_v41 }
 0x7a0   :  { %v3688_v42 = vpop.eup %3687 }
 0x7a1   :  { %3519 = vmatmul.mubr.msk.f32.vlgmr.msra.gmra.mxu1 %vm546_vm5, %v1249_v0  ;;  %v1422_v3 = vmul.f32 %v3688_v42, %v4166_v47 }
 0x7a2   :  { %3527 = vmatpush3.msra.mxu1 %v4130_v4  ;;  %v2104_v36 = vpop.xlane.xlu0 %2103  ;;  %3528 = vmatprep.mubr.msk.f32.mxu1 %vm3736_vm3, %v3735_v41 }
 0x7a3   :  { %3695 = vrcp.f32 %v2104_v36  ;;  %3536 = vmatprep.subr.mxu1 %v3735_v41 }
 0x7a4   :  { %v3690_v16 = vpop.eup %3689 }
 0x7a5   :  { %3529 = vmatmul.mubr.msk.f32.vlgmr.msra.gmra.mxu1 %vm546_vm5, %v1422_v3  ;;  %v1595_v4 = vmul.f32 %v3690_v16, %v4171_v55 }
 0x7a6   :  { %3537 = vmatpush3.msra.mxu1 %v4136_v7  ;;  %v2279_v40 = vpop.xlane.xlu0 %2278  ;;  %3538 = vmatprep.mubr.msk.f32.mxu1 %vm3736_vm3, %v3735_v41 }
 0x7a7   :  { %3697 = vrcp.f32 %v2279_v40  ;;  %3546 = vmatprep.subr.mxu1 %v3735_v41 }
 0x7a8   :  { %v3692_v17 = vpop.eup %3691 }
 0x7a9   :  { %3539 = vmatmul.mubr.msk.f32.vlgmr.msra.gmra.mxu1 %vm546_vm5, %v1595_v4  ;;  %v1768_v7 = vmul.f32 %v3692_v17, %v4176_v62 }
 0x7aa   :  { %3547 = vmatpush3.msra.mxu1 %v4138_v57  ;;  %v2449_v47 = vpop.xlane.xlu0 %2448  ;;  %3548 = vmatprep.mubr.msk.f32.mxu1 %vm3736_vm3, %v3735_v41 }
 0x7ab   :  { %3699 = vrcp.f32 %v2449_v47  ;;  %3556 = vmatprep.subr.mxu1 %v3735_v41 }
 0x7ac   :  { %v3694_v20 = vpop.eup %3693 }
 0x7ad   :  { %3549 = vmatmul.mubr.msk.f32.vlgmr.msra.gmra.mxu1 %vm546_vm5, %v1768_v7  ;;  %v1944_v57 = vmul.f32 %v3694_v20, %v4181_v14 }
 0x7ae   :  { %3557 = vmatpush3.msra.mxu1 %v3846_v19  ;;  %v2619_v55 = vpop.xlane.xlu0 %2618  ;;  %3558 = vmatprep.mubr.msk.f32.mxu1 %vm3736_vm3, %v3735_v41 }
 0x7af   :  { %3701 = vrcp.f32 %v2619_v55  ;;  %3566 = vmatprep.subr.mxu1 %v3735_v41 }
 0x7b0   :  { %v3696_v45 = vpop.eup %3695 }
 0x7b1   :  { %3559 = vmatmul.mubr.msk.f32.vlgmr.msra.gmra.mxu1 %vm546_vm5, %v1944_v57  ;;  %v2106_v19 = vmul.f32 %v3696_v45, %v4186_v21 }
 0x7b2   :  { %3567 = vmatpush3.msra.mxu1 %v4144_v10  ;;  %v2789_v62 = vpop.xlane.xlu1 %2788  ;;  %3568 = vmatprep.mubr.msk.f32.mxu1 %vm3736_vm3, %v3735_v41  ;;  %v2623_v27 = vpop.permute.xlu0 %2622 }
 0x7b3   :  { %3703 = vrcp.f32 %v2789_v62  ;;  %3576 = vmatprep.subr.mxu1 %v3735_v41 }
 0x7b4   :  { %v3698_v24 = vpop.eup %3697 }
 0x7b5   :  { %3569 = vmatmul.mubr.msk.f32.vlgmr.msra.gmra.mxu1 %vm546_vm5, %v2106_v19  ;;  %v2281_v10 = vmul.f32 %v3698_v24, %v4190_v48 }
 0x7b6   :  { %3577 = vmatpush3.msra.mxu1 %v4226_v49  ;;  %3578 = vmatprep.mubr.msk.f32.mxu1 %vm3736_vm3, %v3735_v41  ;;  %v2793_v48 = vpop.permute.xlu1 %2792 }
 0x7b7   :  { %3586 = vmatprep.subr.mxu1 %v3735_v41 }
 0x7b8   :  { %v3700_v14 = vpop.eup %3699 }
 0x7b9   :  { %3579 = vmatmul.mubr.msk.f32.vlgmr.msra.gmra.mxu1 %vm546_vm5, %v2281_v10  ;;  %v2451_v21 = vmul.f32 %v3700_v14, %v4194_v28 }
 0x7ba   :  { %3587 = vmatpush3.msra.mxu1 %v4224_v56  ;;  %3588 = vmatprep.mubr.msk.f32.mxu1 %vm3736_vm3, %v3735_v41  ;;  %v2963_v18 = vpop.permute.xlu1 %2962 }
 0x7bb   :  { %3596 = vmatprep.subr.mxu1 %v3735_v41 }
 0x7bc   :  { %v3702_v25 = vpop.eup %3701 }
 0x7bd   :  { %3589 = vmatmul.mubr.msk.f32.vlgmr.msra.gmra.mxu1 %vm546_vm5, %v2451_v21  ;;  %v2621_v30 = vmul.f32 %v3702_v25, %v4198_v51 }
 0x7be   :  { %3597 = vmatpush3.msra.mxu1 %v2623_v27  ;;  %3598 = vmatprep.mubr.msk.f32.mxu1 %vm3736_vm3, %v3735_v41 }
 0x7bf   :  { %3606 = vmatprep.subr.mxu1 %v3735_v41 }
 0x7c0   :  { %v3704_v15 = vpop.eup %3703 }
 0x7c1   :  { %3599 = vmatmul.mubr.msk.f32.vlgmr.msra.gmra.mxu1 %vm546_vm5, %v2621_v30  ;;  %v2791_v28 = vmul.f32 %v3704_v15, %v4202_v31 }
 0x7c2   :  { %3607 = vmatpush3.msra.mxu1 %v2793_v48  ;;  %3608 = vmatprep.mubr.msk.f32.mxu1 %vm3736_vm3, %v3735_v41 }
 0x7c3   :  { %3616 = vmatprep.subr.mxu1 %v3735_v41 }
 0x7c5   :  { %3609 = vmatmul.mubr.msk.f32.vlgmr.msra.gmra.mxu1 %vm546_vm5, %v2791_v28 }
 0x7c6   :  { %3617 = vmatpush3.msra.mxu1 %v2963_v18  ;;  %3618 = vmatprep.mubr.msk.f32.mxu1 %vm3736_vm3, %v3735_v41 }
 0x7c7   :  { %3626 = vmatprep.subr.mxu1 %v3735_v41 }
 0x7e3   :  { %v2959_v51 = vpop.xlane.xlu0 %2958 }
 0x7e4   :  { %3705 = vrcp.f32 %v2959_v51 }
 0x7eb   :  { %v3129_v34 = vpop.xlane.xlu1 %3128 }
 0x7ec   :  { %3707 = vrcp.f32 %v3129_v34 }
 0x7ef   :  { %v3133_v26 = vpop.permute.xlu1 %3132 }
 0x7f1   :  { %v3706_v23 = vpop.eup %3705 }
 0x7f2   :  { %v2961_v37 = vmul.f32 %v3706_v23, %v4214_v43 }
 0x7f4   :  { %3619 = vmatmul.mubr.msk.f32.vlgmr.msra.gmra.mxu1 %vm546_vm5, %v2961_v37 }
 0x7f5   :  { %3627 = vmatpush3.msra.mxu1 %v3133_v26  ;;  %3628 = vmatprep.mubr.msk.f32.mxu1 %vm3736_vm3, %v3735_v41 }
 0x7f9   :  { %v3708_v31 = vpop.eup %3707 }
 0x7fa   :  { %v3131_v39 = vmul.f32 %v3708_v31, %v4218_v44 }
 0x7fc   :  { %3629 = vmatmul.mubr.msk.f32.vlgmr.msra.gmra.mxu1 %vm546_vm5, %v3131_v39  ;;  %v814_v39 = vadd.f32 %v3976_v54, %v4142_v9 }
 0x859   :  { %v976_v29 = vpop.f32.mrf.mxu1 }
 0x85a   :  { %v983_v32 = vmul.f32 %v4120_v63, %v976_v29 }
 0x85b   :  { %v3500_v46 = vpop.f32.mrf.mxu1 }
 0x85c   :  { %v984_v56 = vsel %vm469_vm4, %v983_v32, 0.0 }
 0x85d   :  { %v1149_v60 = vpop.f32.mrf.mxu1  ;;  %985 = vadd.xlane.f32.xlu0 %v984_v56 }
 0x85e   :  { %v1156_v43 = vmul.f32 %v4124_v1, %v1149_v60 }
 0x85f   :  { %v3510_v49 = vpop.f32.mrf.mxu1 }
 0x860   :  { %v1157_v35 = vsel %vm469_vm4, %v1156_v43, 0.0 }
 0x861   :  { %1158 = vadd.xlane.f32.xlu1 %v1157_v35  ;;  %v1322_v41 = vpop.f32.mrf.mxu1 }
 0x862   :  { %v1329_v50 = vmul.f32 %v4126_v2, %v1322_v41 }
 0x863   :  { %v3520_v44 = vpop.f32.mrf.mxu1 }
 0x864   :  { %v1330_v52 = vsel %vm469_vm4, %v1329_v50, 0.0 }
 0x865   :  { %1331 = vadd.xlane.f32.xlu1 %v1330_v52  ;;  %v1495_v58 = vpop.f32.mrf.mxu1 }
 0x866   :  { %v1502_v59 = vmul.f32 %v4132_v5, %v1495_v58 }
 0x867   :  { %v3530_v61 = vpop.f32.mrf.mxu1 }
 0x868   :  { %v1503_v38 = vsel %vm469_vm4, %v1502_v59, 0.0 }
 0x869   :  { %1504 = vadd.xlane.f32.xlu1 %v1503_v38  ;;  %v1668_v11 = vpop.f32.mrf.mxu1 }
 0x86a   :  { %v1675_v12 = vmul.f32 %v4134_v6, %v1668_v11 }
 0x86b   :  { %v3540_v13 = vpop.f32.mrf.mxu1 }
 0x86c   :  { %v1676_v33 = vsel %vm469_vm4, %v1675_v12, 0.0 }
 0x86d   :  { %1677 = vadd.xlane.f32.xlu1 %v1676_v33  ;;  %v1841_v0 = vpop.f32.mrf.mxu1 }
 0x86e   :  { %v1848_v42 = vmul.f32 %v4140_v8, %v1841_v0 }
 0x86f   :  { %v3550_v36 = vpop.f32.mrf.mxu1 }
 0x870   :  { %v1849_v3 = vsel %vm469_vm4, %v1848_v42, 0.0 }
 0x871   :  { %1850 = vadd.xlane.f32.xlu1 %v1849_v3  ;;  %v2014_v16 = vpop.f32.mrf.mxu1 }
 0x872   :  { %v2188_v40 = vmul.f32 %v3857_v22, %v2014_v16 }
 0x873   :  { %v3560_v4 = vpop.f32.mrf.mxu1 }
 0x874   :  { %v2189_v17 = vsel %vm469_vm4, %v2188_v40, 0.0 }
 0x875   :  { %2190 = vadd.xlane.f32.xlu0 %v2189_v17  ;;  %v2180_v47 = vpop.f32.mrf.mxu1 }
 0x876   :  { %v2184_v7 = vmul.f32 %v2180_v47, %v3974_v53 }
 0x877   :  { %v3570_v20 = vpop.f32.mrf.mxu1 }
 0x878   :  { %v2185_v55 = vsel %vm469_vm4, %v2184_v7, 0.0 }
 0x879   :  { %2186 = vadd.xlane.f32.xlu0 %v2185_v55  ;;  %v2354_v57 = vpop.f32.mrf.mxu1 }
 0x87a   :  { %v2358_v45 = vmul.f32 %v2354_v57, %v4120_v63 }
 0x87b   :  { %v3580_v62 = vpop.f32.mrf.mxu1 }
 0x87c   :  { %v2359_v19 = vsel %vm469_vm4, %v2358_v45, 0.0 }
 0x87d   :  { %2360 = vadd.xlane.f32.xlu1 %v2359_v19  ;;  %v2524_v24 = vpop.f32.mrf.mxu1 }
 0x87e   :  { %v2528_v22 = vmul.f32 %v2524_v24, %v4124_v1 }
 0x87f   :  { %v3590_v10 = vpop.f32.mrf.mxu1 }
 0x880   :  { %v2529_v14 = vsel %vm469_vm4, %v2528_v22, 0.0 }
 0x881   :  { %2530 = vadd.xlane.f32.xlu1 %v2529_v14  ;;  %v2694_v21 = vpop.f32.mrf.mxu1 }
 0x882   :  { %v2698_v53 = vmul.f32 %v2694_v21, %v4126_v2 }
 0x883   :  { %v3600_v25 = vpop.f32.mrf.mxu1 }
 0x884   :  { %v2699_v27 = vsel %vm469_vm4, %v2698_v53, 0.0 }
 0x885   :  { %2700 = vadd.xlane.f32.xlu1 %v2699_v27  ;;  %v2864_v48 = vpop.f32.mrf.mxu1 }
 0x886   :  { %v2868_v63 = vmul.f32 %v2864_v48, %v4132_v5 }
 0x887   :  { %v3610_v30 = vpop.f32.mrf.mxu1 }
 0x888   :  { %v2869_v15 = vsel %vm469_vm4, %v2868_v63, 0.0 }
 0x889   :  { %2870 = vadd.xlane.f32.xlu0 %v2869_v15 }
 0x8b4   :  { %v3034_v28 = vpop.f32.mrf.mxu1 }
 0x8b5   :  { %v3038_v1 = vmul.f32 %v3034_v28, %v4134_v6 }
 0x8b6   :  { %v3620_v18 = vpop.f32.mrf.mxu1 }
 0x8b7   :  { %v3039_v51 = vsel %vm469_vm4, %v3038_v1, 0.0 }
 0x8b8   :  { %3040 = vadd.xlane.f32.xlu0 %v3039_v51 }
 0x8bc   :  { %v3204_v34 = vpop.f32.mrf.mxu1 }
 0x8bd   :  { %v3208_v2 = vmul.f32 %v3204_v34, %v4140_v8  ;;  %v3264_v8 = vld [vmem:[%s4347_s3 + $0xb] ss:$0 sm:$0xff] }
 0x8be   :  { %v3630_v23 = vpop.f32.mrf.mxu1 }
 0x8bf   :  { %v3209_v37 = vsel %vm469_vm4, %v3208_v2, 0.0 }
 0x8c0   :  { %3210 = vadd.xlane.f32.xlu0 %v3209_v37 }
 0x8e6   :  { %v986_v5 = vpop.xlane.xlu0 %985 }
 0x8e7   :  { %v987_v29 = vadd.f32 %v986_v5, %v814_v39 }
 0x8ea   :  { %v1159_v26 = vpop.xlane.xlu1 %1158 }
 0x8eb   :  { %v1160_v6 = vadd.f32 %v1159_v26, %v987_v29 }
 0x8ee   :  { %v1332_v31 = vpop.xlane.xlu1 %1331 }
 0x8ef   :  { %v1333_v46 = vadd.f32 %v1332_v31, %v1160_v6 }
 0x8f2   :  { %v1505_v32 = vpop.xlane.xlu1 %1504 }
 0x8f3   :  { %v1506_v60 = vadd.f32 %v1505_v32, %v1333_v46 }
 0x8f6   :  { %v1678_v56 = vpop.xlane.xlu1 %1677 }
 0x8f7   :  { %v1679_v43 = vadd.f32 %v1678_v56, %v1506_v60 }
 0x8fa   :  { %v1851_v49 = vpop.xlane.xlu1 %1850 }
 0x8fb   :  { %v1852_v35 = vadd.f32 %v1851_v49, %v1679_v43 }
 0x8fd   :  { %v1857_v41 = vadd.f32 %v3264_v8, %v1852_v35 }
 0x8fe   :  { %v2191_v54 = vpop.xlane.xlu0 %2190 }
 0x8ff   :  { %3215 = vst.msk [vmem:[%s4348_s4] sm:$0xff] %vm3214_vm6, %v1857_v41 }
 0x902   :  { %v2187_v50 = vpop.xlane.xlu0 %2186 }
 0x903   :  { %v2192_v52 = vadd.f32 %v2191_v54, %v2187_v50 }
 0x906   :  { %v2361_v9 = vpop.xlane.xlu1 %2360 }
 0x907   :  { %v2362_v58 = vadd.f32 %v2361_v9, %v2192_v52 }
 0x90a   :  { %v2531_v44 = vpop.xlane.xlu1 %2530 }
 0x90b   :  { %v2532_v38 = vadd.f32 %v2531_v44, %v2362_v58 }
 0x90e   :  { %v2701_v59 = vpop.xlane.xlu1 %2700 }
 0x90f   :  { %v2702_v11 = vadd.f32 %v2701_v59, %v2532_v38 }
 0x912   :  { %v2871_v61 = vpop.xlane.xlu0 %2870 }
 0x913   :  { %v2872_v13 = vadd.f32 %v2871_v61, %v2702_v11 }
 0x941   :  { %v3041_v12 = vpop.xlane.xlu0 %3040 }
 0x942   :  { %v3042_v33 = vadd.f32 %v3041_v12, %v2872_v13 }
 0x949   :  { %v3211_v0 = vpop.xlane.xlu0 %3210 }
 0x94a   :  { %v3212_v42 = vadd.f32 %v3211_v0, %v3042_v33 }
 0x94c   :  { %v3213_v36 = vadd.f32 %v3264_v8, %v3212_v42 }
 0x94e   :  { %3216 = vst.msk [vmem:[%s4348_s4 + $0x8] sm:$0xff] %vm3214_vm6, %v3213_v36 }
 0x94f   :  { %3221 = vsyncpa [#allocation3], 1 }

</bundles_post_ra>
